<compile_context>
chip_gen: v5e
topology: v5e:2x2
jax: 0.10.0
libtpu: 0.0.40
codegen_flags: <defaults>
</compile_context>

<pallas_src>
import jax
import jax.numpy as jnp
from jax.experimental import pallas as pl
from jax.experimental.pallas import tpu as pltpu

# ---------------- small, module-consistent sizes ----------------
B = 2             # batch
S = 5             # sequence_length
D = 128           # lstm_hidden_dim == input_size == hidden_size (768 in the original)
H_SPEC = 16       # spectrogram rows (128 in the original)
W_SPEC = D // S   # hidden_size // sequence_length (= 25)
KH = KW = 3
C_OUT = 3
H_OUT = H_SPEC - KH + 1            # 14
W_OUT = W_SPEC - KW + 1            # 23
F = C_OUT * H_OUT * W_OUT          # 966 conv features per (b, s) frame

SB = S * B                         # 10 rows, seq-major: row = t*B + b
K_IN = H_SPEC * W_SPEC             # 400 raw pixels per frame
K_PAD = 512                        # lane-padded MXU contraction width


def _tpos_fused_kernel(x_ref, few_ref, feb_ref, wih_ref, whh_ref, bl_ref,
                       cnw_ref, cnb_ref,
                       last_ref, out_ref, beta_ref,
                       gx_ref):
    # ---- stage 1+2: (conv ∘ flatten ∘ Linear) folded feature projection, all SB rows ----
    # TODO(synk): the original feature_extractor is a pretrained timm resnet18; it is
    # replaced by a flatten+Linear(F->D) stand-in (the Conv2d is folded into it exactly,
    # since no nonlinearity separates them in this stand-in).
    x_bf = x_ref[...].astype(jnp.bfloat16)                                    # one cast, whole block
    feats = jnp.dot(x_bf, few_ref[...],
                    preferred_element_type=jnp.float32) + feb_ref[...]        # (SB, D) f32

    # ---- stage 3: hoisted LSTM input projection for every timestep (off the serial chain) ----
    gx_ref[...] = jnp.dot(feats.astype(jnp.bfloat16), wih_ref[...],
                          preferred_element_type=jnp.float32) + bl_ref[...]   # (SB, 4D)

    # ---- stage 4: single-layer LSTM recurrence (h_0 = c_0 = 0, PyTorch gate order i,f,g,o) ----
    whh = whh_ref[...]                                                        # (D, 4D) bf16
    cnw = cnw_ref[...]                                                        # (1, D)  f32
    h = jnp.zeros((B, D), jnp.float32)
    c_st = jnp.zeros((B, D), jnp.float32)
    on_steps = []          # L2-normalized hidden state per step, (B, D)
    logit_cols = []        # Conv1d(k=1) logit per step, (B, 1)
    for t in range(S):
        gates = gx_ref[t * B:(t + 1) * B, :] + jnp.dot(
            h.astype(jnp.bfloat16), whh, preferred_element_type=jnp.float32)  # (B, 4D)
        i_g = jax.nn.sigmoid(gates[:, 0 * D:1 * D])
        f_g = jax.nn.sigmoid(gates[:, 1 * D:2 * D])
        g_g = jnp.tanh(gates[:, 2 * D:3 * D])
        o_g = jax.nn.sigmoid(gates[:, 3 * D:4 * D])
        c_st = f_g * c_st + i_g * g_g
        h = o_g * jnp.tanh(c_st)
        # stage 5a (kept 2-D, inside the loop): L2 norm + Conv1d(D->1, k=1) logit
        inv_norm = jax.lax.rsqrt(jnp.sum(h * h, axis=-1, keepdims=True) + 1e-12)
        on_t = h * inv_norm                                                   # (B, D)
        on_steps.append(on_t)
        logit_cols.append(jnp.sum(on_t * cnw, axis=-1, keepdims=True)
                          + cnb_ref[...])                                     # (B, 1)

    # ---- stage 5b: softmax over the sequence + beta-weighted outputs (all 2-D) ----
    m = logit_cols[0]
    for t in range(1, S):
        m = jnp.maximum(m, logit_cols[t])
    es = [jnp.exp(lc - m) for lc in logit_cols]
    denom = es[0]
    for t in range(1, S):
        denom = denom + es[t]
    inv_denom = pl.reciprocal(denom, approx=True)                             # EUP, ~1e-3 rel err
    betas = [e * inv_denom for e in es]                                       # list of (B, 1)

    for t in range(S):
        beta_ref[:, t:t + 1] = betas[t]                                       # tiny (B, S) output
        out_ref[t * B:(t + 1) * B, :] = on_steps[t] * betas[t]                # lane-dense row store
    last_ref[...] = on_steps[S - 1]                                           # output[:, -1, :]


def tpos_forward(x, params):
    # seq-major flatten: row = t*B + b  -> per-step x-gates are contiguous slices in-kernel
    x_sm = jnp.transpose(x, (1, 0, 2, 3)).reshape(SB, K_IN)
    x_pad = jnp.pad(x_sm, ((0, 0), (0, K_PAD - K_IN)))                        # zero lane padding

    last, out_sm, beta = pl.pallas_call(
        _tpos_fused_kernel,
        out_shape=(jax.ShapeDtypeStruct((B, D), jnp.float32),      # output[:, -1, :]
                   jax.ShapeDtypeStruct((SB, D), jnp.float32),     # beta-weighted outputs, seq-major
                   jax.ShapeDtypeStruct((B, S), jnp.float32)),     # beta_t
        in_specs=[
            pl.BlockSpec(memory_space=pltpu.MemorySpace.VMEM),     # x (SB, K_PAD) f32
            pl.BlockSpec(memory_space=pltpu.MemorySpace.VMEM),     # folded feature W (K_PAD, D) bf16
            pl.BlockSpec(memory_space=pltpu.MemorySpace.VMEM),     # folded feature b (1, D) f32
            pl.BlockSpec(memory_space=pltpu.MemorySpace.VMEM),     # W_ih^T (D, 4D) bf16
            pl.BlockSpec(memory_space=pltpu.MemorySpace.VMEM),     # W_hh^T (D, 4D) bf16
            pl.BlockSpec(memory_space=pltpu.MemorySpace.VMEM),     # lstm bias (1, 4D) f32
            pl.BlockSpec(memory_space=pltpu.MemorySpace.VMEM),     # cnn weight (1, D) f32
            pl.BlockSpec(memory_space=pltpu.MemorySpace.VMEM),     # cnn bias (1, 1) f32
        ],
        out_specs=(pl.BlockSpec(memory_space=pltpu.MemorySpace.VMEM),) * 3,
        scratch_shapes=[pltpu.VMEM((SB, 4 * D), jnp.float32)],     # hoisted x-gates
    )(x_pad, params["fe_fold_w"], params["fe_fold_b"], params["w_ih_t"],
      params["w_hh_t"], params["b_lstm"], params["cnn_w"], params["cnn_b"])

    out = out_sm.reshape(S, B, D).transpose(1, 0, 2)               # (B, S, D), tiny XLA relayout
    return last, out, beta


tpos_audio_encoder = jax.jit(tpos_forward)


def _fold_conv_into_feature_linear(conv_w, conv_b, fe_core, fe_b):
    """Compose Conv2d(1->3, 3x3, valid) with the flatten+Linear(F->D) stand-in into a single
    (H_SPEC*W_SPEC -> D) affine map.  Exact: no nonlinearity separates the two stages."""
    w_fold = jnp.zeros((H_SPEC, W_SPEC, D), jnp.float32)
    for c in range(C_OUT):
        for kh in range(KH):
            for kw in range(KW):
                w_fold = w_fold.at[kh:kh + H_OUT, kw:kw + W_OUT, :].add(
                    conv_w[c, kh, kw] * fe_core[c])
    b_fold = fe_b + jnp.einsum("c,chwd->d", conv_b, fe_core)[None, :]
    w_flat = w_fold.reshape(K_IN, D)
    w_pad = jnp.concatenate(
        [w_flat, jnp.zeros((K_PAD - K_IN, D), jnp.float32)], axis=0)
    return w_pad.astype(jnp.bfloat16), b_fold


def init_params(key):
    ks = jax.random.split(key, 10)
    # Conv2d(1, 3, (3, 3)) weights/bias (folded into the feature linear below).
    conv_w = jax.random.normal(ks[0], (C_OUT, KH, KW), jnp.float32) * 0.2
    conv_b = jax.random.normal(ks[1], (C_OUT,), jnp.float32) * 0.1
    # Feature-extractor stand-in: flatten + Linear(F -> D) on the conv activations.
    fe_core = jax.random.normal(ks[2], (C_OUT, H_OUT, W_OUT, D), jnp.float32) / jnp.sqrt(
        jnp.float32(F))
    fe_b = jax.random.normal(ks[3], (1, D), jnp.float32) * 0.01
    fe_fold_w, fe_fold_b = _fold_conv_into_feature_linear(conv_w, conv_b, fe_core, fe_b)
    # LSTM(D -> D): PyTorch shapes (4D, D) pre-transposed to (D, 4D); biases summed.
    scale = 1.0 / jnp.sqrt(jnp.float32(D))
    w_ih = jax.random.normal(ks[4], (4 * D, D), jnp.float32) * scale
    w_hh = jax.random.normal(ks[5], (4 * D, D), jnp.float32) * scale
    b_ih = jax.random.normal(ks[6], (4 * D,), jnp.float32) * scale
    b_hh = jax.random.normal(ks[7], (4 * D,), jnp.float32) * scale
    # Conv1d(D, 1, kernel_size=1): weight (1, D, 1) -> (1, D), bias (1,) -> (1, 1).
    cnn_w = jax.random.normal(ks[8], (1, D), jnp.float32) * scale
    cnn_b = jax.random.normal(ks[9], (1, 1), jnp.float32) * 0.1
    return {
        "fe_fold_w": fe_fold_w,                      # (K_PAD, D) bf16, conv folded in
        "fe_fold_b": fe_fold_b,                      # (1, D) f32, conv bias folded in
        "w_ih_t": w_ih.T.astype(jnp.bfloat16),
        "w_hh_t": w_hh.T.astype(jnp.bfloat16),
        "b_lstm": (b_ih + b_hh).reshape(1, 4 * D),
        "cnn_w": cnn_w, "cnn_b": cnn_b,
    }


if __name__ == "__main__":
    key = jax.random.PRNGKey(0)
    k_x, k_p = jax.random.split(key)
    x = jax.random.normal(k_x, (B, S, H_SPEC, W_SPEC), jnp.float32)
    params = init_params(k_p)

    last, out, beta = tpos_audio_encoder(x, params)
    jax.block_until_ready((last, out, beta))

    assert last.shape == (B, D)
    assert out.shape == (B, S, D)
    assert beta.shape == (B, S)
    assert bool(jnp.isfinite(last).all())
    assert bool(jnp.isfinite(out).all())
    assert bool(jnp.isfinite(beta).all())
    # softmax rows sum to ~1 (approx reciprocal => loose tolerance)
    assert bool(jnp.all(jnp.abs(jnp.sum(beta, axis=1) - 1.0) < 3e-2))
    # last output rows are L2-normalized
    assert bool(jnp.all(jnp.abs(jnp.sum(last * last, axis=-1) - 1.0) < 1e-3))
    print("KERNEL_OK")
</pallas_src>

<mosaic_0001>
module attributes {stable_mosaic.version = 11 : i64} {
  func.func @_tpos_fused_kernel(%arg0: memref<10x512xf32, #tpu.memory_space<vmem>>, %arg1: memref<512x128xbf16, #tpu.memory_space<vmem>>, %arg2: memref<1x128xf32, #tpu.memory_space<vmem>>, %arg3: memref<128x512xbf16, #tpu.memory_space<vmem>>, %arg4: memref<128x512xbf16, #tpu.memory_space<vmem>>, %arg5: memref<1x512xf32, #tpu.memory_space<vmem>>, %arg6: memref<1x128xf32, #tpu.memory_space<vmem>>, %arg7: memref<1x1xf32, #tpu.memory_space<vmem>>, %arg8: memref<2x128xf32, #tpu.memory_space<vmem>>, %arg9: memref<10x128xf32, #tpu.memory_space<vmem>>, %arg10: memref<2x5xf32, #tpu.memory_space<vmem>>, %arg11: memref<10x512xf32, #tpu.memory_space<vmem>>) attributes {dimension_semantics = [], scalar_prefetch = 0 : i64, scratch_operands = 1 : i64, tpu.core_type = #tpu.core_type<tc>} {
    %c0 = arith.constant 0 : index
    %c0_0 = arith.constant 0 : index
    %0 = vector.load %arg0[%c0, %c0_0] : memref<10x512xf32, #tpu.memory_space<vmem>>, vector<10x512xf32>
    %1 = arith.truncf %0 : vector<10x512xf32> to vector<10x512xbf16>
    %c0_1 = arith.constant 0 : index
    %c0_2 = arith.constant 0 : index
    %2 = vector.load %arg1[%c0_1, %c0_2] : memref<512x128xbf16, #tpu.memory_space<vmem>>, vector<512x128xbf16>
    %cst = arith.constant dense<0.000000e+00> : vector<10x128xf32>
    %3 = tpu.matmul %1, %2, %cst {dimension_numbers = #tpu.dot_dimension_numbers<[1], [0], [0], [1], [0, 0, 1, 1], [], []>} : vector<10x512xbf16>, vector<512x128xbf16>, vector<10x128xf32> -> vector<10x128xf32>
    %c0_3 = arith.constant 0 : index
    %c0_4 = arith.constant 0 : index
    %4 = vector.load %arg2[%c0_3, %c0_4] : memref<1x128xf32, #tpu.memory_space<vmem>>, vector<1x128xf32>
    %5 = vector.broadcast %4 : vector<1x128xf32> to vector<10x128xf32>
    %6 = arith.addf %3, %5 : vector<10x128xf32>
    %7 = arith.truncf %6 : vector<10x128xf32> to vector<10x128xbf16>
    %c0_5 = arith.constant 0 : index
    %c0_6 = arith.constant 0 : index
    %8 = vector.load %arg3[%c0_5, %c0_6] : memref<128x512xbf16, #tpu.memory_space<vmem>>, vector<128x512xbf16>
    %cst_7 = arith.constant dense<0.000000e+00> : vector<10x512xf32>
    %9 = tpu.matmul %7, %8, %cst_7 {dimension_numbers = #tpu.dot_dimension_numbers<[1], [0], [0], [1], [0, 0, 1, 1], [], []>} : vector<10x128xbf16>, vector<128x512xbf16>, vector<10x512xf32> -> vector<10x512xf32>
    %c0_8 = arith.constant 0 : index
    %c0_9 = arith.constant 0 : index
    %10 = vector.load %arg5[%c0_8, %c0_9] : memref<1x512xf32, #tpu.memory_space<vmem>>, vector<1x512xf32>
    %11 = vector.broadcast %10 : vector<1x512xf32> to vector<10x512xf32>
    %12 = arith.addf %9, %11 : vector<10x512xf32>
    %c0_10 = arith.constant 0 : index
    %c0_11 = arith.constant 0 : index
    %13 = vector.load %arg11[%c0_10, %c0_11] : memref<10x512xf32, #tpu.memory_space<vmem>>, vector<10x512xf32>
    tpu.vector_store %arg11[%c0_10, %c0_11], %12 {strides = array<i32>} : memref<10x512xf32, #tpu.memory_space<vmem>>, vector<10x512xf32>,
    %c0_12 = arith.constant 0 : index
    %c0_13 = arith.constant 0 : index
    %14 = vector.load %arg4[%c0_12, %c0_13] : memref<128x512xbf16, #tpu.memory_space<vmem>>, vector<128x512xbf16>
    %c0_14 = arith.constant 0 : index
    %c0_15 = arith.constant 0 : index
    %15 = vector.load %arg6[%c0_14, %c0_15] : memref<1x128xf32, #tpu.memory_space<vmem>>, vector<1x128xf32>
    %cst_16 = arith.constant 0.000000e+00 : f32
    %16 = vector.broadcast %cst_16 : f32 to vector<2x128xf32>
    %cst_17 = arith.constant 0.000000e+00 : f32
    %17 = vector.broadcast %cst_17 : f32 to vector<2x128xf32>
    %c0_18 = arith.constant 0 : index
    %c0_19 = arith.constant 0 : index
    %18 = vector.load %arg11[%c0_18, %c0_19] : memref<10x512xf32, #tpu.memory_space<vmem>>, vector<2x512xf32>
    %19 = arith.truncf %16 : vector<2x128xf32> to vector<2x128xbf16>
    %cst_20 = arith.constant dense<0.000000e+00> : vector<2x512xf32>
    %20 = tpu.matmul %19, %14, %cst_20 {dimension_numbers = #tpu.dot_dimension_numbers<[1], [0], [0], [1], [0, 0, 1, 1], [], []>} : vector<2x128xbf16>, vector<128x512xbf16>, vector<2x512xf32> -> vector<2x512xf32>
    %21 = arith.addf %18, %20 : vector<2x512xf32>
    %22 = vector.extract_strided_slice %21 {offsets = [0, 0], sizes = [2, 128], strides = [1, 1]} : vector<2x512xf32> to vector<2x128xf32>
    %23 = arith.negf %22 : vector<2x128xf32>
    %24 = math.exp %23 : vector<2x128xf32>
    %cst_21 = arith.constant 1.000000e+00 : f32
    %25 = vector.broadcast %cst_21 : f32 to vector<2x128xf32>
    %26 = arith.addf %25, %24 : vector<2x128xf32>
    %27 = arith.divf %25, %26 : vector<2x128xf32>
    %28 = vector.extract_strided_slice %21 {offsets = [0, 128], sizes = [2, 128], strides = [1, 1]} : vector<2x512xf32> to vector<2x128xf32>
    %29 = arith.negf %28 : vector<2x128xf32>
    %30 = math.exp %29 : vector<2x128xf32>
    %cst_22 = arith.constant 1.000000e+00 : f32
    %31 = vector.broadcast %cst_22 : f32 to vector<2x128xf32>
    %32 = arith.addf %31, %30 : vector<2x128xf32>
    %33 = arith.divf %31, %32 : vector<2x128xf32>
    %34 = vector.extract_strided_slice %21 {offsets = [0, 256], sizes = [2, 128], strides = [1, 1]} : vector<2x512xf32> to vector<2x128xf32>
    %35 = math.tanh %34 : vector<2x128xf32>
    %36 = vector.extract_strided_slice %21 {offsets = [0, 384], sizes = [2, 128], strides = [1, 1]} : vector<2x512xf32> to vector<2x128xf32>
    %37 = arith.negf %36 : vector<2x128xf32>
    %38 = math.exp %37 : vector<2x128xf32>
    %cst_23 = arith.constant 1.000000e+00 : f32
    %39 = vector.broadcast %cst_23 : f32 to vector<2x128xf32>
    %40 = arith.addf %39, %38 : vector<2x128xf32>
    %41 = arith.divf %39, %40 : vector<2x128xf32>
    %42 = arith.mulf %33, %17 : vector<2x128xf32>
    %43 = arith.mulf %27, %35 : vector<2x128xf32>
    %44 = arith.addf %42, %43 : vector<2x128xf32>
    %45 = math.tanh %44 : vector<2x128xf32>
    %46 = arith.mulf %41, %45 : vector<2x128xf32>
    %47 = arith.mulf %46, %46 : vector<2x128xf32>
    %cst_24 = arith.constant dense<0.000000e+00> : vector<2xf32>
    %48 = vector.multi_reduction <add>, %47, %cst_24 [1] : vector<2x128xf32> to vector<2xf32>
    %49 = vector.shape_cast %48 : vector<2xf32> to vector<2x1xf32>
    %cst_25 = arith.constant 9.99999996E-13 : f32
    %50 = vector.broadcast %cst_25 : f32 to vector<2x1xf32>
    %51 = arith.addf %49, %50 : vector<2x1xf32>
    %52 = math.rsqrt %51 : vector<2x1xf32>
    %53 = vector.broadcast %52 : vector<2x1xf32> to vector<2x128xf32>
    %54 = arith.mulf %46, %53 : vector<2x128xf32>
    %55 = vector.broadcast %15 : vector<1x128xf32> to vector<2x128xf32>
    %56 = arith.mulf %54, %55 : vector<2x128xf32>
    %cst_26 = arith.constant dense<0.000000e+00> : vector<2xf32>
    %57 = vector.multi_reduction <add>, %56, %cst_26 [1] : vector<2x128xf32> to vector<2xf32>
    %58 = vector.shape_cast %57 : vector<2xf32> to vector<2x1xf32>
    %c0_27 = arith.constant 0 : index
    %c0_28 = arith.constant 0 : index
    %59 = vector.load %arg7[%c0_27, %c0_28] : memref<1x1xf32, #tpu.memory_space<vmem>>, vector<1x1xf32>
    %60 = vector.broadcast %59 : vector<1x1xf32> to vector<2x1xf32>
    %61 = arith.addf %58, %60 : vector<2x1xf32>
    %c2 = arith.constant 2 : index
    %c0_29 = arith.constant 0 : index
    %62 = vector.load %arg11[%c2, %c0_29] : memref<10x512xf32, #tpu.memory_space<vmem>>, vector<2x512xf32>
    %63 = arith.truncf %46 : vector<2x128xf32> to vector<2x128xbf16>
    %cst_30 = arith.constant dense<0.000000e+00> : vector<2x512xf32>
    %64 = tpu.matmul %63, %14, %cst_30 {dimension_numbers = #tpu.dot_dimension_numbers<[1], [0], [0], [1], [0, 0, 1, 1], [], []>} : vector<2x128xbf16>, vector<128x512xbf16>, vector<2x512xf32> -> vector<2x512xf32>
    %65 = arith.addf %62, %64 : vector<2x512xf32>
    %66 = vector.extract_strided_slice %65 {offsets = [0, 0], sizes = [2, 128], strides = [1, 1]} : vector<2x512xf32> to vector<2x128xf32>
    %67 = arith.negf %66 : vector<2x128xf32>
    %68 = math.exp %67 : vector<2x128xf32>
    %cst_31 = arith.constant 1.000000e+00 : f32
    %69 = vector.broadcast %cst_31 : f32 to vector<2x128xf32>
    %70 = arith.addf %69, %68 : vector<2x128xf32>
    %71 = arith.divf %69, %70 : vector<2x128xf32>
    %72 = vector.extract_strided_slice %65 {offsets = [0, 128], sizes = [2, 128], strides = [1, 1]} : vector<2x512xf32> to vector<2x128xf32>
    %73 = arith.negf %72 : vector<2x128xf32>
    %74 = math.exp %73 : vector<2x128xf32>
    %cst_32 = arith.constant 1.000000e+00 : f32
    %75 = vector.broadcast %cst_32 : f32 to vector<2x128xf32>
    %76 = arith.addf %75, %74 : vector<2x128xf32>
    %77 = arith.divf %75, %76 : vector<2x128xf32>
    %78 = vector.extract_strided_slice %65 {offsets = [0, 256], sizes = [2, 128], strides = [1, 1]} : vector<2x512xf32> to vector<2x128xf32>
    %79 = math.tanh %78 : vector<2x128xf32>
    %80 = vector.extract_strided_slice %65 {offsets = [0, 384], sizes = [2, 128], strides = [1, 1]} : vector<2x512xf32> to vector<2x128xf32>
    %81 = arith.negf %80 : vector<2x128xf32>
    %82 = math.exp %81 : vector<2x128xf32>
    %cst_33 = arith.constant 1.000000e+00 : f32
    %83 = vector.broadcast %cst_33 : f32 to vector<2x128xf32>
    %84 = arith.addf %83, %82 : vector<2x128xf32>
    %85 = arith.divf %83, %84 : vector<2x128xf32>
    %86 = arith.mulf %77, %44 : vector<2x128xf32>
    %87 = arith.mulf %71, %79 : vector<2x128xf32>
    %88 = arith.addf %86, %87 : vector<2x128xf32>
    %89 = math.tanh %88 : vector<2x128xf32>
    %90 = arith.mulf %85, %89 : vector<2x128xf32>
    %91 = arith.mulf %90, %90 : vector<2x128xf32>
    %cst_34 = arith.constant dense<0.000000e+00> : vector<2xf32>
    %92 = vector.multi_reduction <add>, %91, %cst_34 [1] : vector<2x128xf32> to vector<2xf32>
    %93 = vector.shape_cast %92 : vector<2xf32> to vector<2x1xf32>
    %cst_35 = arith.constant 9.99999996E-13 : f32
    %94 = vector.broadcast %cst_35 : f32 to vector<2x1xf32>
    %95 = arith.addf %93, %94 : vector<2x1xf32>
    %96 = math.rsqrt %95 : vector<2x1xf32>
    %97 = vector.broadcast %96 : vector<2x1xf32> to vector<2x128xf32>
    %98 = arith.mulf %90, %97 : vector<2x128xf32>
    %99 = vector.broadcast %15 : vector<1x128xf32> to vector<2x128xf32>
    %100 = arith.mulf %98, %99 : vector<2x128xf32>
    %cst_36 = arith.constant dense<0.000000e+00> : vector<2xf32>
    %101 = vector.multi_reduction <add>, %100, %cst_36 [1] : vector<2x128xf32> to vector<2xf32>
    %102 = vector.shape_cast %101 : vector<2xf32> to vector<2x1xf32>
    %c0_37 = arith.constant 0 : index
    %c0_38 = arith.constant 0 : index
    %103 = vector.load %arg7[%c0_37, %c0_38] : memref<1x1xf32, #tpu.memory_space<vmem>>, vector<1x1xf32>
    %104 = vector.broadcast %103 : vector<1x1xf32> to vector<2x1xf32>
    %105 = arith.addf %102, %104 : vector<2x1xf32>
    %c4 = arith.constant 4 : index
    %c0_39 = arith.constant 0 : index
    %106 = vector.load %arg11[%c4, %c0_39] : memref<10x512xf32, #tpu.memory_space<vmem>>, vector<2x512xf32>
    %107 = arith.truncf %90 : vector<2x128xf32> to vector<2x128xbf16>
    %cst_40 = arith.constant dense<0.000000e+00> : vector<2x512xf32>
    %108 = tpu.matmul %107, %14, %cst_40 {dimension_numbers = #tpu.dot_dimension_numbers<[1], [0], [0], [1], [0, 0, 1, 1], [], []>} : vector<2x128xbf16>, vector<128x512xbf16>, vector<2x512xf32> -> vector<2x512xf32>
    %109 = arith.addf %106, %108 : vector<2x512xf32>
    %110 = vector.extract_strided_slice %109 {offsets = [0, 0], sizes = [2, 128], strides = [1, 1]} : vector<2x512xf32> to vector<2x128xf32>
    %111 = arith.negf %110 : vector<2x128xf32>
    %112 = math.exp %111 : vector<2x128xf32>
    %cst_41 = arith.constant 1.000000e+00 : f32
    %113 = vector.broadcast %cst_41 : f32 to vector<2x128xf32>
    %114 = arith.addf %113, %112 : vector<2x128xf32>
    %115 = arith.divf %113, %114 : vector<2x128xf32>
    %116 = vector.extract_strided_slice %109 {offsets = [0, 128], sizes = [2, 128], strides = [1, 1]} : vector<2x512xf32> to vector<2x128xf32>
    %117 = arith.negf %116 : vector<2x128xf32>
    %118 = math.exp %117 : vector<2x128xf32>
    %cst_42 = arith.constant 1.000000e+00 : f32
    %119 = vector.broadcast %cst_42 : f32 to vector<2x128xf32>
    %120 = arith.addf %119, %118 : vector<2x128xf32>
    %121 = arith.divf %119, %120 : vector<2x128xf32>
    %122 = vector.extract_strided_slice %109 {offsets = [0, 256], sizes = [2, 128], strides = [1, 1]} : vector<2x512xf32> to vector<2x128xf32>
    %123 = math.tanh %122 : vector<2x128xf32>
    %124 = vector.extract_strided_slice %109 {offsets = [0, 384], sizes = [2, 128], strides = [1, 1]} : vector<2x512xf32> to vector<2x128xf32>
    %125 = arith.negf %124 : vector<2x128xf32>
    %126 = math.exp %125 : vector<2x128xf32>
    %cst_43 = arith.constant 1.000000e+00 : f32
    %127 = vector.broadcast %cst_43 : f32 to vector<2x128xf32>
    %128 = arith.addf %127, %126 : vector<2x128xf32>
    %129 = arith.divf %127, %128 : vector<2x128xf32>
    %130 = arith.mulf %121, %88 : vector<2x128xf32>
    %131 = arith.mulf %115, %123 : vector<2x128xf32>
    %132 = arith.addf %130, %131 : vector<2x128xf32>
    %133 = math.tanh %132 : vector<2x128xf32>
    %134 = arith.mulf %129, %133 : vector<2x128xf32>
    %135 = arith.mulf %134, %134 : vector<2x128xf32>
    %cst_44 = arith.constant dense<0.000000e+00> : vector<2xf32>
    %136 = vector.multi_reduction <add>, %135, %cst_44 [1] : vector<2x128xf32> to vector<2xf32>
    %137 = vector.shape_cast %136 : vector<2xf32> to vector<2x1xf32>
    %cst_45 = arith.constant 9.99999996E-13 : f32
    %138 = vector.broadcast %cst_45 : f32 to vector<2x1xf32>
    %139 = arith.addf %137, %138 : vector<2x1xf32>
    %140 = math.rsqrt %139 : vector<2x1xf32>
    %141 = vector.broadcast %140 : vector<2x1xf32> to vector<2x128xf32>
    %142 = arith.mulf %134, %141 : vector<2x128xf32>
    %143 = vector.broadcast %15 : vector<1x128xf32> to vector<2x128xf32>
    %144 = arith.mulf %142, %143 : vector<2x128xf32>
    %cst_46 = arith.constant dense<0.000000e+00> : vector<2xf32>
    %145 = vector.multi_reduction <add>, %144, %cst_46 [1] : vector<2x128xf32> to vector<2xf32>
    %146 = vector.shape_cast %145 : vector<2xf32> to vector<2x1xf32>
    %c0_47 = arith.constant 0 : index
    %c0_48 = arith.constant 0 : index
    %147 = vector.load %arg7[%c0_47, %c0_48] : memref<1x1xf32, #tpu.memory_space<vmem>>, vector<1x1xf32>
    %148 = vector.broadcast %147 : vector<1x1xf32> to vector<2x1xf32>
    %149 = arith.addf %146, %148 : vector<2x1xf32>
    %c6 = arith.constant 6 : index
    %c0_49 = arith.constant 0 : index
    %150 = vector.load %arg11[%c6, %c0_49] : memref<10x512xf32, #tpu.memory_space<vmem>>, vector<2x512xf32>
    %151 = arith.truncf %134 : vector<2x128xf32> to vector<2x128xbf16>
    %cst_50 = arith.constant dense<0.000000e+00> : vector<2x512xf32>
    %152 = tpu.matmul %151, %14, %cst_50 {dimension_numbers = #tpu.dot_dimension_numbers<[1], [0], [0], [1], [0, 0, 1, 1], [], []>} : vector<2x128xbf16>, vector<128x512xbf16>, vector<2x512xf32> -> vector<2x512xf32>
    %153 = arith.addf %150, %152 : vector<2x512xf32>
    %154 = vector.extract_strided_slice %153 {offsets = [0, 0], sizes = [2, 128], strides = [1, 1]} : vector<2x512xf32> to vector<2x128xf32>
    %155 = arith.negf %154 : vector<2x128xf32>
    %156 = math.exp %155 : vector<2x128xf32>
    %cst_51 = arith.constant 1.000000e+00 : f32
    %157 = vector.broadcast %cst_51 : f32 to vector<2x128xf32>
    %158 = arith.addf %157, %156 : vector<2x128xf32>
    %159 = arith.divf %157, %158 : vector<2x128xf32>
    %160 = vector.extract_strided_slice %153 {offsets = [0, 128], sizes = [2, 128], strides = [1, 1]} : vector<2x512xf32> to vector<2x128xf32>
    %161 = arith.negf %160 : vector<2x128xf32>
    %162 = math.exp %161 : vector<2x128xf32>
    %cst_52 = arith.constant 1.000000e+00 : f32
    %163 = vector.broadcast %cst_52 : f32 to vector<2x128xf32>
    %164 = arith.addf %163, %162 : vector<2x128xf32>
    %165 = arith.divf %163, %164 : vector<2x128xf32>
    %166 = vector.extract_strided_slice %153 {offsets = [0, 256], sizes = [2, 128], strides = [1, 1]} : vector<2x512xf32> to vector<2x128xf32>
    %167 = math.tanh %166 : vector<2x128xf32>
    %168 = vector.extract_strided_slice %153 {offsets = [0, 384], sizes = [2, 128], strides = [1, 1]} : vector<2x512xf32> to vector<2x128xf32>
    %169 = arith.negf %168 : vector<2x128xf32>
    %170 = math.exp %169 : vector<2x128xf32>
    %cst_53 = arith.constant 1.000000e+00 : f32
    %171 = vector.broadcast %cst_53 : f32 to vector<2x128xf32>
    %172 = arith.addf %171, %170 : vector<2x128xf32>
    %173 = arith.divf %171, %172 : vector<2x128xf32>
    %174 = arith.mulf %165, %132 : vector<2x128xf32>
    %175 = arith.mulf %159, %167 : vector<2x128xf32>
    %176 = arith.addf %174, %175 : vector<2x128xf32>
    %177 = math.tanh %176 : vector<2x128xf32>
    %178 = arith.mulf %173, %177 : vector<2x128xf32>
    %179 = arith.mulf %178, %178 : vector<2x128xf32>
    %cst_54 = arith.constant dense<0.000000e+00> : vector<2xf32>
    %180 = vector.multi_reduction <add>, %179, %cst_54 [1] : vector<2x128xf32> to vector<2xf32>
    %181 = vector.shape_cast %180 : vector<2xf32> to vector<2x1xf32>
    %cst_55 = arith.constant 9.99999996E-13 : f32
    %182 = vector.broadcast %cst_55 : f32 to vector<2x1xf32>
    %183 = arith.addf %181, %182 : vector<2x1xf32>
    %184 = math.rsqrt %183 : vector<2x1xf32>
    %185 = vector.broadcast %184 : vector<2x1xf32> to vector<2x128xf32>
    %186 = arith.mulf %178, %185 : vector<2x128xf32>
    %187 = vector.broadcast %15 : vector<1x128xf32> to vector<2x128xf32>
    %188 = arith.mulf %186, %187 : vector<2x128xf32>
    %cst_56 = arith.constant dense<0.000000e+00> : vector<2xf32>
    %189 = vector.multi_reduction <add>, %188, %cst_56 [1] : vector<2x128xf32> to vector<2xf32>
    %190 = vector.shape_cast %189 : vector<2xf32> to vector<2x1xf32>
    %c0_57 = arith.constant 0 : index
    %c0_58 = arith.constant 0 : index
    %191 = vector.load %arg7[%c0_57, %c0_58] : memref<1x1xf32, #tpu.memory_space<vmem>>, vector<1x1xf32>
    %192 = vector.broadcast %191 : vector<1x1xf32> to vector<2x1xf32>
    %193 = arith.addf %190, %192 : vector<2x1xf32>
    %c8 = arith.constant 8 : index
    %c0_59 = arith.constant 0 : index
    %194 = vector.load %arg11[%c8, %c0_59] : memref<10x512xf32, #tpu.memory_space<vmem>>, vector<2x512xf32>
    %195 = arith.truncf %178 : vector<2x128xf32> to vector<2x128xbf16>
    %cst_60 = arith.constant dense<0.000000e+00> : vector<2x512xf32>
    %196 = tpu.matmul %195, %14, %cst_60 {dimension_numbers = #tpu.dot_dimension_numbers<[1], [0], [0], [1], [0, 0, 1, 1], [], []>} : vector<2x128xbf16>, vector<128x512xbf16>, vector<2x512xf32> -> vector<2x512xf32>
    %197 = arith.addf %194, %196 : vector<2x512xf32>
    %198 = vector.extract_strided_slice %197 {offsets = [0, 0], sizes = [2, 128], strides = [1, 1]} : vector<2x512xf32> to vector<2x128xf32>
    %199 = arith.negf %198 : vector<2x128xf32>
    %200 = math.exp %199 : vector<2x128xf32>
    %cst_61 = arith.constant 1.000000e+00 : f32
    %201 = vector.broadcast %cst_61 : f32 to vector<2x128xf32>
    %202 = arith.addf %201, %200 : vector<2x128xf32>
    %203 = arith.divf %201, %202 : vector<2x128xf32>
    %204 = vector.extract_strided_slice %197 {offsets = [0, 128], sizes = [2, 128], strides = [1, 1]} : vector<2x512xf32> to vector<2x128xf32>
    %205 = arith.negf %204 : vector<2x128xf32>
    %206 = math.exp %205 : vector<2x128xf32>
    %cst_62 = arith.constant 1.000000e+00 : f32
    %207 = vector.broadcast %cst_62 : f32 to vector<2x128xf32>
    %208 = arith.addf %207, %206 : vector<2x128xf32>
    %209 = arith.divf %207, %208 : vector<2x128xf32>
    %210 = vector.extract_strided_slice %197 {offsets = [0, 256], sizes = [2, 128], strides = [1, 1]} : vector<2x512xf32> to vector<2x128xf32>
    %211 = math.tanh %210 : vector<2x128xf32>
    %212 = vector.extract_strided_slice %197 {offsets = [0, 384], sizes = [2, 128], strides = [1, 1]} : vector<2x512xf32> to vector<2x128xf32>
    %213 = arith.negf %212 : vector<2x128xf32>
    %214 = math.exp %213 : vector<2x128xf32>
    %cst_63 = arith.constant 1.000000e+00 : f32
    %215 = vector.broadcast %cst_63 : f32 to vector<2x128xf32>
    %216 = arith.addf %215, %214 : vector<2x128xf32>
    %217 = arith.divf %215, %216 : vector<2x128xf32>
    %218 = arith.mulf %209, %176 : vector<2x128xf32>
    %219 = arith.mulf %203, %211 : vector<2x128xf32>
    %220 = arith.addf %218, %219 : vector<2x128xf32>
    %221 = math.tanh %220 : vector<2x128xf32>
    %222 = arith.mulf %217, %221 : vector<2x128xf32>
    %223 = arith.mulf %222, %222 : vector<2x128xf32>
    %cst_64 = arith.constant dense<0.000000e+00> : vector<2xf32>
    %224 = vector.multi_reduction <add>, %223, %cst_64 [1] : vector<2x128xf32> to vector<2xf32>
    %225 = vector.shape_cast %224 : vector<2xf32> to vector<2x1xf32>
    %cst_65 = arith.constant 9.99999996E-13 : f32
    %226 = vector.broadcast %cst_65 : f32 to vector<2x1xf32>
    %227 = arith.addf %225, %226 : vector<2x1xf32>
    %228 = math.rsqrt %227 : vector<2x1xf32>
    %229 = vector.broadcast %228 : vector<2x1xf32> to vector<2x128xf32>
    %230 = arith.mulf %222, %229 : vector<2x128xf32>
    %231 = vector.broadcast %15 : vector<1x128xf32> to vector<2x128xf32>
    %232 = arith.mulf %230, %231 : vector<2x128xf32>
    %cst_66 = arith.constant dense<0.000000e+00> : vector<2xf32>
    %233 = vector.multi_reduction <add>, %232, %cst_66 [1] : vector<2x128xf32> to vector<2xf32>
    %234 = vector.shape_cast %233 : vector<2xf32> to vector<2x1xf32>
    %c0_67 = arith.constant 0 : index
    %c0_68 = arith.constant 0 : index
    %235 = vector.load %arg7[%c0_67, %c0_68] : memref<1x1xf32, #tpu.memory_space<vmem>>, vector<1x1xf32>
    %236 = vector.broadcast %235 : vector<1x1xf32> to vector<2x1xf32>
    %237 = arith.addf %234, %236 : vector<2x1xf32>
    %238 = arith.maximumf %61, %105 : vector<2x1xf32>
    %239 = arith.maximumf %238, %149 : vector<2x1xf32>
    %240 = arith.maximumf %239, %193 : vector<2x1xf32>
    %241 = arith.maximumf %240, %237 : vector<2x1xf32>
    %242 = arith.subf %61, %241 : vector<2x1xf32>
    %243 = math.exp %242 : vector<2x1xf32>
    %244 = arith.subf %105, %241 : vector<2x1xf32>
    %245 = math.exp %244 : vector<2x1xf32>
    %246 = arith.subf %149, %241 : vector<2x1xf32>
    %247 = math.exp %246 : vector<2x1xf32>
    %248 = arith.subf %193, %241 : vector<2x1xf32>
    %249 = math.exp %248 : vector<2x1xf32>
    %250 = arith.subf %237, %241 : vector<2x1xf32>
    %251 = math.exp %250 : vector<2x1xf32>
    %252 = arith.addf %243, %245 : vector<2x1xf32>
    %253 = arith.addf %252, %247 : vector<2x1xf32>
    %254 = arith.addf %253, %249 : vector<2x1xf32>
    %255 = arith.addf %254, %251 : vector<2x1xf32>
    %256 = tpu.reciprocal %255 {approx = true} : vector<2x1xf32> -> vector<2x1xf32>
    %257 = arith.mulf %243, %256 : vector<2x1xf32>
    %258 = arith.mulf %245, %256 : vector<2x1xf32>
    %259 = arith.mulf %247, %256 : vector<2x1xf32>
    %260 = arith.mulf %249, %256 : vector<2x1xf32>
    %261 = arith.mulf %251, %256 : vector<2x1xf32>
    %c0_69 = arith.constant 0 : index
    %c0_70 = arith.constant 0 : index
    %262 = vector.load %arg10[%c0_69, %c0_70] : memref<2x5xf32, #tpu.memory_space<vmem>>, vector<2x1xf32>
    tpu.vector_store %arg10[%c0_69, %c0_70], %257 {strides = array<i32>} : memref<2x5xf32, #tpu.memory_space<vmem>>, vector<2x1xf32>,
    %263 = vector.broadcast %257 : vector<2x1xf32> to vector<2x128xf32>
    %264 = arith.mulf %54, %263 : vector<2x128xf32>
    %c0_71 = arith.constant 0 : index
    %c0_72 = arith.constant 0 : index
    %265 = vector.load %arg9[%c0_71, %c0_72] : memref<10x128xf32, #tpu.memory_space<vmem>>, vector<2x128xf32>
    tpu.vector_store %arg9[%c0_71, %c0_72], %264 {strides = array<i32>} : memref<10x128xf32, #tpu.memory_space<vmem>>, vector<2x128xf32>,
    %c0_73 = arith.constant 0 : index
    %c1 = arith.constant 1 : index
    %266 = vector.load %arg10[%c0_73, %c1] : memref<2x5xf32, #tpu.memory_space<vmem>>, vector<2x1xf32>
    tpu.vector_store %arg10[%c0_73, %c1], %258 {strides = array<i32>} : memref<2x5xf32, #tpu.memory_space<vmem>>, vector<2x1xf32>,
    %267 = vector.broadcast %258 : vector<2x1xf32> to vector<2x128xf32>
    %268 = arith.mulf %98, %267 : vector<2x128xf32>
    %c2_74 = arith.constant 2 : index
    %c0_75 = arith.constant 0 : index
    %269 = vector.load %arg9[%c2_74, %c0_75] : memref<10x128xf32, #tpu.memory_space<vmem>>, vector<2x128xf32>
    tpu.vector_store %arg9[%c2_74, %c0_75], %268 {strides = array<i32>} : memref<10x128xf32, #tpu.memory_space<vmem>>, vector<2x128xf32>,
    %c0_76 = arith.constant 0 : index
    %c2_77 = arith.constant 2 : index
    %270 = vector.load %arg10[%c0_76, %c2_77] : memref<2x5xf32, #tpu.memory_space<vmem>>, vector<2x1xf32>
    tpu.vector_store %arg10[%c0_76, %c2_77], %259 {strides = array<i32>} : memref<2x5xf32, #tpu.memory_space<vmem>>, vector<2x1xf32>,
    %271 = vector.broadcast %259 : vector<2x1xf32> to vector<2x128xf32>
    %272 = arith.mulf %142, %271 : vector<2x128xf32>
    %c4_78 = arith.constant 4 : index
    %c0_79 = arith.constant 0 : index
    %273 = vector.load %arg9[%c4_78, %c0_79] : memref<10x128xf32, #tpu.memory_space<vmem>>, vector<2x128xf32>
    tpu.vector_store %arg9[%c4_78, %c0_79], %272 {strides = array<i32>} : memref<10x128xf32, #tpu.memory_space<vmem>>, vector<2x128xf32>,
    %c0_80 = arith.constant 0 : index
    %c3 = arith.constant 3 : index
    %274 = vector.load %arg10[%c0_80, %c3] : memref<2x5xf32, #tpu.memory_space<vmem>>, vector<2x1xf32>
    tpu.vector_store %arg10[%c0_80, %c3], %260 {strides = array<i32>} : memref<2x5xf32, #tpu.memory_space<vmem>>, vector<2x1xf32>,
    %275 = vector.broadcast %260 : vector<2x1xf32> to vector<2x128xf32>
    %276 = arith.mulf %186, %275 : vector<2x128xf32>
    %c6_81 = arith.constant 6 : index
    %c0_82 = arith.constant 0 : index
    %277 = vector.load %arg9[%c6_81, %c0_82] : memref<10x128xf32, #tpu.memory_space<vmem>>, vector<2x128xf32>
    tpu.vector_store %arg9[%c6_81, %c0_82], %276 {strides = array<i32>} : memref<10x128xf32, #tpu.memory_space<vmem>>, vector<2x128xf32>,
    %c0_83 = arith.constant 0 : index
    %c4_84 = arith.constant 4 : index
    %278 = vector.load %arg10[%c0_83, %c4_84] : memref<2x5xf32, #tpu.memory_space<vmem>>, vector<2x1xf32>
    tpu.vector_store %arg10[%c0_83, %c4_84], %261 {strides = array<i32>} : memref<2x5xf32, #tpu.memory_space<vmem>>, vector<2x1xf32>,
    %279 = vector.broadcast %261 : vector<2x1xf32> to vector<2x128xf32>
    %280 = arith.mulf %230, %279 : vector<2x128xf32>
    %c8_85 = arith.constant 8 : index
    %c0_86 = arith.constant 0 : index
    %281 = vector.load %arg9[%c8_85, %c0_86] : memref<10x128xf32, #tpu.memory_space<vmem>>, vector<2x128xf32>
    tpu.vector_store %arg9[%c8_85, %c0_86], %280 {strides = array<i32>} : memref<10x128xf32, #tpu.memory_space<vmem>>, vector<2x128xf32>,
    %c0_87 = arith.constant 0 : index
    %c0_88 = arith.constant 0 : index
    %282 = vector.load %arg8[%c0_87, %c0_88] : memref<2x128xf32, #tpu.memory_space<vmem>>, vector<2x128xf32>
    tpu.vector_store %arg8[%c0_87, %c0_88], %230 {strides = array<i32>} : memref<2x128xf32, #tpu.memory_space<vmem>>, vector<2x128xf32>,
    return
  }
}

</mosaic_0001>

<bundles_post_ra>
// kernel: tpos_forward.1
= control target key start
LH: loop header
LB: loop body
LE: loop exit
PB: predicated region body
PF: predicated region fallthrough
CT: control target
= control target key end

     0   :  { %s3231_s0 = inlined_call_operand.vmem [shape: f32[10,512], index: 0, kind: input, shape index: {}]   ;;  %s3232_s1 = inlined_call_operand.vmem [shape: bf16[512,128], index: 1, kind: input, shape index: {}]   ;;  %s3233_s2 = inlined_call_operand.vmem [shape: f32[1,128], index: 2, kind: input, shape index: {}]   ;;  %s3234_s3 = inlined_call_operand.vmem [shape: bf16[128,512], index: 3, kind: input, shape index: {}]   ;;  %s3235_s4 = inlined_call_operand.hbm [shape: bf16[128,512], index: 4, kind: input, shape index: {}]   ;;  %s3236_s5 = inlined_call_operand.vmem [shape: f32[1,512], index: 5, kind: input, shape index: {}]   ;;  %s3237_s6 = inlined_call_operand.vmem [shape: f32[1,128], index: 6, kind: input, shape index: {}]   ;;  %s3238_s7 = inlined_call_operand.<no memory space> [shape: f32[1,1], index: 7, kind: input, shape index: {}]   ;;  %s3239_s8 = inlined_call_operand.hbm [shape: f32[2,128], index: 8, kind: output, shape index: {0}]   ;;  %s3240_s9 = inlined_call_operand.vmem [shape: f32[10,128], index: 9, kind: output, shape index: {1}]   ;;  %s3241_s10 = inlined_call_operand.hbm [shape: f32[2,5], index: 10, kind: output, shape index: {2}]  }
   0x1   :  { %v16_v0 = vstv %s3238_s7 }
   0x2   :  { %17 = vst [vmem:[#allocation3] sm:$0x1] %v16_v0 }
   0x3   :  { %18 = vsyncpa [#allocation5], 0 }
   0x4   :  { %19 = vsyncpa [#allocation6], 0 }
   0x5   :  { %20 = vsyncpa [#allocation9], 0  ;;  %s33_s17 = sshll.u32 %s3235_s4, 4  ;;  %s2480_s18 = smov [#allocation4]   ;;  %s34_s17 = int_to_ptr.hbm [resolvable:$true] %s33_s17 }
   0x6   :  { %s35_s19 = sshll.u32 %s2480_s18, 4  ;;  %s2481_s20 = smov 256   ;;  %s36_s19 = int_to_ptr.vmem [resolvable:$true] %s35_s19 }
   0x7   :  { %s2482_s21 = smov 16  }
   0x8   :  { %41 = dma.hbm_to_vmem [thread:$0]  %s34_s17, 4096, %s36_s19, [#allocation5], %s2481_s20, %s2481_s20, %s2482_s21  }
   0x9   :  { %2474 = dma.done.wait [#allocation5], 4096  }
   0xa   :  { %2475 = vsyncadd [#allocation5], 4294963200  ;;  %v2195_v1 = vld [vmem:[%s3232_s1 + $0x38] sm:$0xff]  ;;  %v2194_v5 = vld [vmem:[%s3232_s1 + $0x30] sm:$0xff]  ;;  %s2485_s7 = smov 1   ;;  %s1759_s26 = sshll.u32 %s3239_s8, 4  ;;  %s1760_s26 = int_to_ptr.hbm [resolvable:$true] %s1759_s26 }
   0xb   :  { %v2203_v2 = vld [vmem:[%s3232_s1 + $0x78] sm:$0xff]  ;;  %325 = vmatpush.bf16.msra.mxu0 %v2195_v1  ;;  %v2202_v6 = vld [vmem:[%s3232_s1 + $0x70] sm:$0xff]  ;;  %v2193_v9 = vld [vmem:[%s3232_s1 + $0x28] sm:$0xff]  ;;  %s2486_s4 = smov [#allocation7]   ;;  %s2487_s27 = smov 3  }
   0xc   :  { %v2211_v3 = vld [vmem:[%s3232_s1 + $0xb8] sm:$0xff]  ;;  %339 = vmatpush.bf16.msra.mxu1 %v2203_v2  ;;  %v2210_v7 = vld [vmem:[%s3232_s1 + $0xb0] sm:$0xff]  ;;  %v2201_v10 = vld [vmem:[%s3232_s1 + $0x68] sm:$0xff]  ;;  %s2488_s28 = smov 4   ;;  %s2489_s16 = smov [#allocation8]  }
   0xd   :  { %v2219_v4 = vld [vmem:[%s3232_s1 + $0xf8] sm:$0xff]  ;;  %353 = vmatpush.bf16.msra.mxu2 %v2211_v3  ;;  %v2218_v8 = vld [vmem:[%s3232_s1 + $0xf0] sm:$0xff]  ;;  %v2209_v11 = vld [vmem:[%s3232_s1 + $0xa8] sm:$0xff]  ;;  %s1772_s19 = sshll.u32 %s3241_s10, 4  ;;  %s1773_s19 = int_to_ptr.hbm [resolvable:$true] %s1772_s19 }
   0xe   :  { %367 = vmatpush.bf16.msra.mxu3 %v2219_v4  ;;  %v2217_v12 = vld [vmem:[%s3232_s1 + $0xe8] sm:$0xff]  ;;  %v2192_v13 = vld [vmem:[%s3232_s1 + $0x20] sm:$0xff]  ;;  %v2191_v17 = vld [vmem:[%s3232_s1 + $0x18] sm:$0xff] }
   0xf   :  { %326 = vmatpush.bf16.msra.mxu0 %v2194_v5  ;;  %v2200_v14 = vld [vmem:[%s3232_s1 + $0x60] sm:$0xff]  ;;  %v2199_v18 = vld [vmem:[%s3232_s1 + $0x58] sm:$0xff]  ;;  %v2190_v21 = vld [vmem:[%s3232_s1 + $0x10] sm:$0xff] }
  0x10   :  { %340 = vmatpush.bf16.msra.mxu1 %v2202_v6  ;;  %v2208_v15 = vld [vmem:[%s3232_s1 + $0xa0] sm:$0xff]  ;;  %v2207_v19 = vld [vmem:[%s3232_s1 + $0x98] sm:$0xff]  ;;  %v2198_v22 = vld [vmem:[%s3232_s1 + $0x50] sm:$0xff] }
  0x11   :  { %354 = vmatpush.bf16.msra.mxu2 %v2210_v7  ;;  %v2216_v16 = vld [vmem:[%s3232_s1 + $0xe0] sm:$0xff]  ;;  %v2215_v20 = vld [vmem:[%s3232_s1 + $0xd8] sm:$0xff]  ;;  %v2206_v23 = vld [vmem:[%s3232_s1 + $0x90] sm:$0xff] }
  0x12   :  { %368 = vmatpush.bf16.msra.mxu3 %v2218_v8  ;;  %v2214_v24 = vld [vmem:[%s3232_s1 + $0xd0] sm:$0xff]  ;;  %v2189_v25 = vld [vmem:[%s3232_s1 + $0x8] sm:$0xff]  ;;  %v2188_v29 = vld [vmem:[%s3232_s1] sm:$0xff] }
  0x13   :  { %327 = vmatpush.bf16.msra.mxu0 %v2193_v9  ;;  %v2197_v26 = vld [vmem:[%s3232_s1 + $0x48] sm:$0xff]  ;;  %v2196_v30 = vld [vmem:[%s3232_s1 + $0x40] sm:$0xff]  ;;  %v55_v38 = vld [vmem:[%s3231_s0 + $0x10] sm:$0xff] }
  0x14   :  { %341 = vmatpush.bf16.msra.mxu1 %v2201_v10  ;;  %v2205_v27 = vld [vmem:[%s3232_s1 + $0x88] sm:$0xff]  ;;  %v53_v31 = vld [vmem:[%s3231_s0] sm:$0xff]  ;;  %v2250_v39 = vld [vmem:[%s3234_s3 + $0xec] sm:$0xf0] }
  0x15   :  { %355 = vmatpush.bf16.msra.mxu2 %v2209_v11  ;;  %v2213_v28 = vld [vmem:[%s3232_s1 + $0xc8] sm:$0xff]  ;;  %v57_v32 = vld [vmem:[%s3231_s0 + $0x20] sm:$0x3]  ;;  %v2248_v40 = vld [vmem:[%s3234_s3 + $0xe4] sm:$0xf] }
  0x16   :  { %369 = vmatpush.bf16.msra.mxu3 %v2217_v12  ;;  %v54_v33 = vld [vmem:[%s3231_s0 + $0x8] sm:$0xff]  ;;  %v2031_v35 = vld [vmem:[%s3234_s3 + $0xe0] sm:$0xf]  ;;  %v2033_v41 = vld [vmem:[%s3234_s3 + $0xf0] sm:$0xf0]  ;;  %v61_v53 = vpack.c.bf16 %v57_v32, %v53_v31 }
  0x17   :  { %328 = vmatpush.bf16.msra.mxu0 %v2192_v13  ;;  %v58_v34 = vld [vmem:[%s3231_s0 + $0x28] sm:$0x3]  ;;  %v2204_v36 = vld [vmem:[%s3232_s1 + $0x80] sm:$0xff]  ;;  %v59_v42 = vld [vmem:[%s3231_s0 + $0x30] sm:$0x3]  ;;  %v2032_v48 = vor.u32 %v2250_v39, %v2031_v35  ;;  %v2036_v49 = vor.u32 %v2248_v40, %v2033_v41 }
  0x18   :  { %342 = vmatpush.bf16.msra.mxu1 %v2200_v14  ;;  %v2212_v37 = vld [vmem:[%s3232_s1 + $0xc0] sm:$0xff]  ;;  %v56_v43 = vld [vmem:[%s3231_s0 + $0x18] sm:$0xff]  ;;  %v2039_v45 = vld [vmem:[%s3234_s3 + $0xe8] sm:$0xf]  ;;  %v62_v54 = vpack.c.bf16 %v58_v34, %v54_v33  ;;  %v63_v57 = vpack.c.bf16 %v59_v42, %v55_v38  ;;  %s1770_s1 = sshll.u32 %s2489_s16, 4  ;;  %s1771_s1 = int_to_ptr.vmem [resolvable:$true] %s1770_s1 }
  0x19   :  { %356 = vmatpush.bf16.msra.mxu2 %v2208_v15  ;;  %v60_v44 = vld [vmem:[%s3231_s0 + $0x38] sm:$0x3]  ;;  %v2249_v47 = vld [vmem:[%s3234_s3 + $0xec] sm:$0xf]  ;;  %v2041_v50 = vld [vmem:[%s3234_s3 + $0xf8] sm:$0xf0] }
  0x1a   :  { %370 = vmatpush.bf16.msra.mxu3 %v2216_v16  ;;  %v2251_v46 = vld [vmem:[%s3234_s3 + $0xf4] sm:$0xf0]  ;;  %v2015_v51 = vld [vmem:[%s3234_s3 + $0xc0] sm:$0xf]  ;;  %v2246_v52 = vld [vmem:[%s3234_s3 + $0xcc] sm:$0xf0]  ;;  %v64_v58 = vpack.c.bf16 %v60_v44, %v56_v43  ;;  %v2044_v60 = vor.u32 %v2249_v47, %v2041_v50 }
  0x1b   :  { %329 = vmatpush.bf16.msra.mxu0 %v2191_v17  ;;  %v2244_v55 = vld [vmem:[%s3234_s3 + $0xc4] sm:$0xf]  ;;  %v2017_v56 = vld [vmem:[%s3234_s3 + $0xd0] sm:$0xf0]  ;;  %v2040_v59 = vor.u32 %v2251_v46, %v2039_v45  ;;  %v2023_v61 = vld [vmem:[%s3234_s3 + $0xc8] sm:$0xf]  ;;  %v2016_v63 = vor.u32 %v2246_v52, %v2015_v51 }
  0x1c   :  { %343 = vmatpush.bf16.msra.mxu1 %v2199_v18  ;;  %v2247_v62 = vld [vmem:[%s3234_s3 + $0xd4] sm:$0xf0]  ;;  %v2020_v0 = vor.u32 %v2244_v55, %v2017_v56  ;;  %v2245_v1 = vld [vmem:[%s3234_s3 + $0xcc] sm:$0xf]  ;;  %v2025_v2 = vld [vmem:[%s3234_s3 + $0xd8] sm:$0xf0] }
  0x1d   :  { %357 = vmatpush.bf16.msra.mxu2 %v2207_v19  ;;  %v1999_v3 = vld [vmem:[%s3234_s3 + $0xa0] sm:$0xf]  ;;  %v2242_v4 = vld [vmem:[%s3234_s3 + $0xac] sm:$0xf0]  ;;  %v2240_v5 = vld [vmem:[%s3234_s3 + $0xa4] sm:$0xf]  ;;  %v2024_v7 = vor.u32 %v2247_v62, %v2023_v61  ;;  %v2028_v8 = vor.u32 %v2245_v1, %v2025_v2 }
  0x1e   :  { %371 = vmatpush.bf16.msra.mxu3 %v2215_v20  ;;  %v2001_v6 = vld [vmem:[%s3234_s3 + $0xb0] sm:$0xf0]  ;;  %v2007_v9 = vld [vmem:[%s3234_s3 + $0xa8] sm:$0xf]  ;;  %v2243_v10 = vld [vmem:[%s3234_s3 + $0xb4] sm:$0xf0]  ;;  %v2000_v11 = vor.u32 %v2242_v4, %v1999_v3 }
  0x1f   :  { %330 = vmatpush.bf16.msra.mxu0 %v2190_v21  ;;  %v2004_v12 = vor.u32 %v2240_v5, %v2001_v6  ;;  %v2241_v13 = vld [vmem:[%s3234_s3 + $0xac] sm:$0xf]  ;;  %v2009_v14 = vld [vmem:[%s3234_s3 + $0xb8] sm:$0xf0]  ;;  %v1983_v15 = vld [vmem:[%s3234_s3 + $0x80] sm:$0xf]  ;;  %v2008_v19 = vor.u32 %v2243_v10, %v2007_v9 }
  0x20   :  { %344 = vmatpush.bf16.msra.mxu1 %v2198_v22  ;;  %v2238_v16 = vld [vmem:[%s3234_s3 + $0x8c] sm:$0xf0]  ;;  %v2236_v17 = vld [vmem:[%s3234_s3 + $0x84] sm:$0xf]  ;;  %v1985_v18 = vld [vmem:[%s3234_s3 + $0x90] sm:$0xf0]  ;;  %v2012_v20 = vor.u32 %v2241_v13, %v2009_v14 }
  0x21   :  { %358 = vmatpush.bf16.msra.mxu2 %v2206_v23  ;;  %v1991_v21 = vld [vmem:[%s3234_s3 + $0x88] sm:$0xf]  ;;  %v2239_v22 = vld [vmem:[%s3234_s3 + $0x94] sm:$0xf0]  ;;  %v1984_v23 = vor.u32 %v2238_v16, %v1983_v15  ;;  %v1977_v38 = vld [vmem:[%s3234_s3 + $0x78] sm:$0xf0] }
  0x22   :  { %372 = vmatpush.bf16.msra.mxu3 %v2214_v24  ;;  %v1988_v24 = vor.u32 %v2236_v17, %v1985_v18  ;;  %v1992_v31 = vor.u32 %v2239_v22, %v1991_v21  ;;  %v1975_v33 = vld [vmem:[%s3234_s3 + $0x68] sm:$0xf]  ;;  %v2235_v34 = vld [vmem:[%s3234_s3 + $0x74] sm:$0xf0]  ;;  %v1951_v39 = vld [vmem:[%s3234_s3 + $0x40] sm:$0xf] }
  0x23   :  { %331 = vmatpush.bf16.msra.mxu0 %v2189_v25  ;;  %v2237_v25 = vld [vmem:[%s3234_s3 + $0x8c] sm:$0xf]  ;;  %v2230_v40 = vld [vmem:[%s3234_s3 + $0x4c] sm:$0xf0]  ;;  %v2228_v41 = vld [vmem:[%s3234_s3 + $0x44] sm:$0xf]  ;;  %v1976_v43 = vor.u32 %v2235_v34, %v1975_v33 }
  0x24   :  { %345 = vmatpush.bf16.msra.mxu1 %v2197_v26  ;;  %v1993_v26 = vld [vmem:[%s3234_s3 + $0x98] sm:$0xf0]  ;;  %v1953_v42 = vld [vmem:[%s3234_s3 + $0x50] sm:$0xf0]  ;;  %v1959_v45 = vld [vmem:[%s3234_s3 + $0x48] sm:$0xf]  ;;  %v1952_v46 = vor.u32 %v2230_v40, %v1951_v39 }
  0x25   :  { %359 = vmatpush.bf16.msra.mxu2 %v2205_v27  ;;  %v1967_v27 = vld [vmem:[%s3234_s3 + $0x60] sm:$0xf]  ;;  %v1996_v32 = vor.u32 %v2237_v25, %v1993_v26  ;;  %v1956_v47 = vor.u32 %v2228_v41, %v1953_v42  ;;  %v1961_v50 = vld [vmem:[%s3234_s3 + $0x58] sm:$0xf0]  ;;  %v2224_v55 = vld [vmem:[%s3234_s3 + $0x24] sm:$0xf] }
  0x26   :  { %373 = vmatpush.bf16.msra.mxu3 %v2213_v28  ;;  %v2234_v28 = vld [vmem:[%s3234_s3 + $0x6c] sm:$0xf0]  ;;  %v2225_v62 = vld [vmem:[%s3234_s3 + $0x2c] sm:$0xf]  ;;  %v1919_v1 = vld [vmem:[%s3234_s3] sm:$0xf] }
  0x27   :  { %332 = vmatpush.bf16.msra.mxu0 %v2188_v29  ;;  %v2232_v29 = vld [vmem:[%s3234_s3 + $0x64] sm:$0xf]  ;;  %v1968_v35 = vor.u32 %v2234_v28, %v1967_v27  ;;  %v2222_v2 = vld [vmem:[%s3234_s3 + $0xc] sm:$0xf0]  ;;  %v1921_v5 = vld [vmem:[%s3234_s3 + $0x10] sm:$0xf0] }
  0x28   :  { %346 = vmatpush.bf16.msra.mxu1 %v2196_v30  ;;  %v1969_v30 = vld [vmem:[%s3234_s3 + $0x70] sm:$0xf0]  ;;  %v2220_v3 = vld [vmem:[%s3234_s3 + $0x4] sm:$0xf]  ;;  %v1920_v4 = vor.u32 %v2222_v2, %v1919_v1  ;;  %v1927_v6 = vld [vmem:[%s3234_s3 + $0x8] sm:$0xf] }
  0x29   :  { %360 = vmatpush.bf16.msra.mxu2 %v2204_v36  ;;  %v1972_v36 = vor.u32 %v2232_v29, %v1969_v30  ;;  %v2221_v10 = vld [vmem:[%s3234_s3 + $0xc] sm:$0xf]  ;;  %v2282_v14 = vld [vmem:[#allocation4 + $0xec] sm:$0xf0]  ;;  %v2280_v15 = vld [vmem:[#allocation4 + $0xe4] sm:$0xf] }
  0x2a   :  { %374 = vmatpush.bf16.msra.mxu3 %v2212_v37  ;;  %333 = vmatmul.bf16.vlgmr.msra.gmra.mxu0 %v61_v53  ;;  %v2233_v37 = vld [vmem:[%s3234_s3 + $0x6c] sm:$0xf]  ;;  %v1935_v53 = vld [vmem:[%s3234_s3 + $0x20] sm:$0xf]  ;;  %v2161_v16 = vld [vmem:[#allocation4 + $0xf0] sm:$0xf0] }
  0x2b   :  { %584 = vmatpush.bf16.msrb.mxu0 %v2032_v48  ;;  %347 = vmatmul.bf16.vlgmr.msra.gmra.mxu1 %v62_v54  ;;  %v1980_v44 = vor.u32 %v2233_v37, %v1977_v38  ;;  %v2231_v48 = vld [vmem:[%s3234_s3 + $0x54] sm:$0xf0]  ;;  %v2226_v54 = vld [vmem:[%s3234_s3 + $0x2c] sm:$0xf0]  ;;  %v2865_v18 = vor.u32 %v2280_v15, %v2161_v16  ;;  %v2276_v28 = vld [vmem:[#allocation4 + $0xc4] sm:$0xf] }
  0x2c   :  { %598 = vmatpush.bf16.msrb.mxu1 %v2036_v49  ;;  %361 = vmatmul.bf16.vlgmr.msra.gmra.mxu2 %v63_v57  ;;  %v2229_v49 = vld [vmem:[%s3234_s3 + $0x4c] sm:$0xf]  ;;  %v1960_v51 = vor.u32 %v2231_v48, %v1959_v45  ;;  %v1936_v56 = vor.u32 %v2226_v54, %v1935_v53  ;;  %v1937_v57 = vld [vmem:[%s3234_s3 + $0x30] sm:$0xf0]  ;;  %v2153_v34 = vld [vmem:[#allocation4 + $0xd8] sm:$0xf0] }
  0x2d   :  { %375 = vmatmul.bf16.vlgmr.msra.gmra.mxu3 %v64_v58  ;;  %612 = vmatpush.bf16.msrb.mxu2 %v2040_v59  ;;  %v1964_v52 = vor.u32 %v2229_v49, %v1961_v50  ;;  %v1943_v58 = vld [vmem:[%s3234_s3 + $0x28] sm:$0xf]  ;;  %v2227_v59 = vld [vmem:[%s3234_s3 + $0x34] sm:$0xf0]  ;;  %v2281_v21 = vld [vmem:[#allocation4 + $0xec] sm:$0xf] }
  0x2e   :  { %626 = vmatpush.bf16.msrb.mxu3 %v2044_v60  ;;  %v1940_v60 = vor.u32 %v2224_v55, %v1937_v57  ;;  %v1944_v61 = vor.u32 %v2227_v59, %v1943_v58  ;;  %v2278_v25 = vld [vmem:[#allocation4 + $0xcc] sm:$0xf0]  ;;  %v2145_v29 = vld [vmem:[#allocation4 + $0xd0] sm:$0xf0]  ;;  %v2151_v30 = vld [vmem:[#allocation4 + $0xc8] sm:$0xf] }
  0x2f   :  { %585 = vmatpush.bf16.msrb.mxu0 %v2016_v63  ;;  %v1945_v63 = vld [vmem:[%s3234_s3 + $0x38] sm:$0xf0]  ;;  %v2277_v33 = vld [vmem:[#allocation4 + $0xcc] sm:$0xf]  ;;  %v2127_v37 = vld [vmem:[#allocation4 + $0xa0] sm:$0xf] }
  0x30   :  { %599 = vmatpush.bf16.msrb.mxu1 %v2020_v0  ;;  %v1948_v0 = vor.u32 %v2225_v62, %v1945_v63  ;;  %v2274_v38 = vld [vmem:[#allocation4 + $0xac] sm:$0xf0]  ;;  %v2272_v39 = vld [vmem:[#allocation4 + $0xa4] sm:$0xf]  ;;  %v2129_v41 = vld [vmem:[#allocation4 + $0xb0] sm:$0xf0] }
  0x31   :  { %613 = vmatpush.bf16.msrb.mxu2 %v2024_v7  ;;  %v2223_v7 = vld [vmem:[%s3234_s3 + $0x14] sm:$0xf0]  ;;  %v2885_v40 = vor.u32 %v2274_v38, %v2127_v37  ;;  %v2135_v42 = vld [vmem:[#allocation4 + $0xa8] sm:$0xf]  ;;  %v2111_v49 = vld [vmem:[#allocation4 + $0x80] sm:$0xf] }
  0x32   :  { %627 = vmatpush.bf16.msrb.mxu3 %v2028_v8  ;;  %v1924_v8 = vor.u32 %v2220_v3, %v1921_v5  ;;  %v1928_v9 = vor.u32 %v2223_v7, %v1927_v6  ;;  %v2270_v50 = vld [vmem:[#allocation4 + $0x8c] sm:$0xf0]  ;;  %v2113_v53 = vld [vmem:[#allocation4 + $0x90] sm:$0xf0]  ;;  %v2119_v54 = vld [vmem:[#allocation4 + $0x88] sm:$0xf] }
  0x33   :  { %586 = vmatpush.bf16.msrb.mxu0 %v2000_v11  ;;  %v1929_v11 = vld [vmem:[%s3234_s3 + $0x18] sm:$0xf0]  ;;  %v2269_v58 = vld [vmem:[#allocation4 + $0x8c] sm:$0xf]  ;;  %v2266_v62 = vld [vmem:[#allocation4 + $0x6c] sm:$0xf0] }
  0x34   :  { %600 = vmatpush.bf16.msrb.mxu1 %v2004_v12  ;;  %v2159_v12 = vld [vmem:[#allocation4 + $0xe0] sm:$0xf]  ;;  %v1932_v13 = vor.u32 %v2221_v10, %v1929_v11  ;;  %v2271_v55 = vld [vmem:[#allocation4 + $0x94] sm:$0xf0]  ;;  %v2121_v59 = vld [vmem:[#allocation4 + $0x98] sm:$0xf0] }
  0x35   :  { %614 = vmatpush.bf16.msrb.mxu2 %v2008_v19  ;;  %v2863_v17 = vor.u32 %v2282_v14, %v2159_v12  ;;  %v2167_v19 = vld [vmem:[#allocation4 + $0xe8] sm:$0xf]  ;;  %v2902_v57 = vor.u32 %v2271_v55, %v2119_v54  ;;  %v2264_v63 = vld [vmem:[#allocation4 + $0x64] sm:$0xf]  ;;  %v2097_v1 = vld [vmem:[#allocation4 + $0x70] sm:$0xf0] }
  0x36   :  { %628 = vmatpush.bf16.msrb.mxu3 %v2012_v20  ;;  %v2283_v20 = vld [vmem:[#allocation4 + $0xf4] sm:$0xf0]  ;;  %v2103_v2 = vld [vmem:[#allocation4 + $0x68] sm:$0xf]  ;;  %v2265_v6 = vld [vmem:[#allocation4 + $0x6c] sm:$0xf] }
  0x37   :  { %587 = vmatpush.bf16.msrb.mxu0 %v1984_v23  ;;  %v2867_v22 = vor.u32 %v2283_v20, %v2167_v19  ;;  %v2169_v23 = vld [vmem:[#allocation4 + $0xf8] sm:$0xf0]  ;;  %v2267_v3 = vld [vmem:[#allocation4 + $0x74] sm:$0xf0]  ;;  %v2262_v10 = vld [vmem:[#allocation4 + $0x4c] sm:$0xf0] }
  0x38   :  { %601 = vmatpush.bf16.msrb.mxu1 %v1988_v24  ;;  %v2143_v24 = vld [vmem:[#allocation4 + $0xc0] sm:$0xf]  ;;  %v2871_v26 = vor.u32 %v2281_v21, %v2169_v23  ;;  %v2915_v5 = vor.u32 %v2267_v3, %v2103_v2  ;;  %v2105_v7 = vld [vmem:[#allocation4 + $0x78] sm:$0xf0]  ;;  %v2260_v11 = vld [vmem:[#allocation4 + $0x44] sm:$0xf] }
  0x39   :  { %615 = vmatpush.bf16.msrb.mxu2 %v1992_v31  ;;  %v2873_v27 = vor.u32 %v2278_v25, %v2143_v24  ;;  %v2876_v31 = vor.u32 %v2276_v28, %v2145_v29  ;;  %v2081_v12 = vld [vmem:[#allocation4 + $0x50] sm:$0xf0]  ;;  %v2087_v15 = vld [vmem:[#allocation4 + $0x48] sm:$0xf]  ;;  %v2263_v16 = vld [vmem:[#allocation4 + $0x54] sm:$0xf0] }
  0x3a   :  { %629 = vmatpush.bf16.msrb.mxu3 %v1996_v32  ;;  %v2279_v32 = vld [vmem:[#allocation4 + $0xd4] sm:$0xf0]  ;;  %v2923_v14 = vor.u32 %v2260_v11, %v2081_v12  ;;  %v2261_v19 = vld [vmem:[#allocation4 + $0x4c] sm:$0xf]  ;;  %v2926_v20 = vor.u32 %v2263_v16, %v2087_v15  ;;  %v2089_v21 = vld [vmem:[#allocation4 + $0x58] sm:$0xf0] }
  0x3b   :  { %588 = vmatpush.bf16.msrb.mxu0 %v1968_v35  ;;  %v2879_v35 = vor.u32 %v2279_v32, %v2151_v30  ;;  %v2063_v23 = vld [vmem:[#allocation4 + $0x20] sm:$0xf]  ;;  %v2258_v24 = vld [vmem:[#allocation4 + $0x2c] sm:$0xf0]  ;;  %v2929_v25 = vor.u32 %v2261_v19, %v2089_v21  ;;  %v2256_v28 = vld [vmem:[#allocation4 + $0x24] sm:$0xf] }
  0x3c   :  { %602 = vmatpush.bf16.msrb.mxu1 %v1972_v36  ;;  %v2881_v36 = vor.u32 %v2277_v33, %v2153_v34  ;;  %v2065_v29 = vld [vmem:[#allocation4 + $0x30] sm:$0xf0]  ;;  %v2071_v30 = vld [vmem:[#allocation4 + $0x28] sm:$0xf]  ;;  %v2259_v32 = vld [vmem:[#allocation4 + $0x34] sm:$0xf0]  ;;  %v2933_v37 = vor.u32 %v2258_v24, %v2063_v23 }
  0x3d   :  { %616 = vmatpush.bf16.msrb.mxu2 %v1976_v43  ;;  %v2275_v43 = vld [vmem:[#allocation4 + $0xb4] sm:$0xf0]  ;;  %v2257_v33 = vld [vmem:[#allocation4 + $0x2c] sm:$0xf]  ;;  %v2073_v34 = vld [vmem:[#allocation4 + $0x38] sm:$0xf0]  ;;  %v2935_v38 = vor.u32 %v2256_v28, %v2065_v29 }
  0x3e   :  { %630 = vmatpush.bf16.msrb.mxu3 %v1980_v44  ;;  %v2888_v44 = vor.u32 %v2272_v39, %v2129_v41  ;;  %v2890_v45 = vor.u32 %v2275_v43, %v2135_v42  ;;  %v2047_v39 = vld [vmem:[#allocation4] sm:$0xf]  ;;  %v2938_v41 = vor.u32 %v2259_v32, %v2071_v30  ;;  %v2254_v42 = vld [vmem:[#allocation4 + $0xc] sm:$0xf0]  ;;  %v2252_v43 = vld [vmem:[#allocation4 + $0x4] sm:$0xf] }
  0x3f   :  { %589 = vmatpush.bf16.msrb.mxu0 %v1952_v46  ;;  %v2273_v46 = vld [vmem:[#allocation4 + $0xac] sm:$0xf]  ;;  %v2057_v54 = vld [vmem:[#allocation4 + $0x18] sm:$0xf0]  ;;  %v2483_v55 = vmov 0   ;;  %s1757_s0 = sshll.u32 %s2486_s4, 4  ;;  %s1758_s0 = int_to_ptr.vmem [resolvable:$true] %s1757_s0 }
  0x40   :  { %603 = vmatpush.bf16.msrb.mxu1 %v1956_v47  ;;  %v2137_v47 = vld [vmem:[#allocation4 + $0xb8] sm:$0xf0]  ;;  %2294 = vset.pattern.permute.xlu1 %v2483_v55 }
  0x41   :  { %617 = vmatpush.bf16.msrb.mxu2 %v1960_v51  ;;  %v2893_v48 = vor.u32 %v2273_v46, %v2137_v47  ;;  %v2268_v51 = vld [vmem:[#allocation4 + $0x84] sm:$0xf]  ;;  %v2049_v46 = vld [vmem:[#allocation4 + $0x10] sm:$0xf0]  ;;  %v2941_v47 = vor.u32 %v2257_v33, %v2073_v34  ;;  %2295 = vset.pattern.permute.xlu2 %v2483_v55  ;;  %v414_v29 = vld [vmem:[%s3236_s5] sm:$0xf] }
  0x42   :  { %631 = vmatpush.bf16.msrb.mxu3 %v1964_v52  ;;  %v2897_v52 = vor.u32 %v2270_v50, %v2111_v49  ;;  %v2055_v49 = vld [vmem:[#allocation4 + $0x8] sm:$0xf]  ;;  %v2255_v50 = vld [vmem:[#allocation4 + $0x14] sm:$0xf0]  ;;  %2296 = vset.pattern.permute.xlu0 %v2483_v55  ;;  %v416_v30 = vperm.slane %v414_v29, 0  ;;  %v417_v32 = vperm.slane %v414_v29, 1 }
  0x43   :  { %590 = vmatpush.bf16.msrb.mxu0 %v1936_v56  ;;  %v2900_v56 = vor.u32 %v2268_v51, %v2113_v53  ;;  %v2253_v53 = vld [vmem:[#allocation4 + $0xc] sm:$0xf] }
  0x44   :  { %604 = vmatpush.bf16.msrb.mxu1 %v1940_v60  ;;  %v2905_v60 = vor.u32 %v2269_v58, %v2121_v59  ;;  %v2945_v58 = vor.u32 %v2254_v42, %v2047_v39  ;;  %v2947_v59 = vor.u32 %v2252_v43, %v2049_v46  ;;  %v418_v43 = vperm.slane %v414_v29, 2 }
  0x45   :  { %618 = vmatpush.bf16.msrb.mxu2 %v1944_v61  ;;  %v2095_v61 = vld [vmem:[#allocation4 + $0x60] sm:$0xf]  ;;  %v419_v46 = vperm.slane %v414_v29, 3 }
  0x46   :  { %632 = vmatpush.bf16.msrb.mxu3 %v1948_v0  ;;  %v2910_v0 = vor.u32 %v2266_v62, %v2095_v61  ;;  %v2297_v61 = vld [vmem:[%s3233_s2] ss:$0 sm:$0xff]  ;;  %v2953_v62 = vor.u32 %v2255_v50, %v2055_v49 }
  0x47   :  { %591 = vmatpush.bf16.msrb.mxu0 %v1920_v4  ;;  %v2913_v4 = vor.u32 %v2264_v63, %v2097_v1  ;;  %v2956_v1 = vor.u32 %v2253_v53, %v2057_v54 }
  0x48   :  { %605 = vmatpush.bf16.msrb.mxu1 %v1924_v8  ;;  %v2079_v8 = vld [vmem:[#allocation4 + $0x40] sm:$0xf] }
  0x49   :  { %619 = vmatpush.bf16.msrb.mxu2 %v1928_v9  ;;  %v2917_v9 = vor.u32 %v2265_v6, %v2105_v7 }
  0x4a   :  { %633 = vmatpush.bf16.msrb.mxu3 %v1932_v13  ;;  %v2921_v13 = vor.u32 %v2262_v10, %v2079_v8 }
  0x4b   :  { %845 = vmatpush.bf16.msra.mxu0 %v2863_v17 }
  0x4c   :  { %858 = vmatpush.bf16.msra.mxu1 %v2865_v18 }
  0x4d   :  { %871 = vmatpush.bf16.msra.mxu2 %v2867_v22 }
  0x4e   :  { %884 = vmatpush.bf16.msra.mxu3 %v2871_v26 }
  0x4f   :  { %846 = vmatpush.bf16.msra.mxu0 %v2873_v27 }
  0x50   :  { %859 = vmatpush.bf16.msra.mxu1 %v2876_v31 }
  0x51   :  { %872 = vmatpush.bf16.msra.mxu2 %v2879_v35 }
  0x52   :  { %885 = vmatpush.bf16.msra.mxu3 %v2881_v36 }
  0x53   :  { %847 = vmatpush.bf16.msra.mxu0 %v2885_v40 }
  0x54   :  { %860 = vmatpush.bf16.msra.mxu1 %v2888_v44 }
  0x55   :  { %873 = vmatpush.bf16.msra.mxu2 %v2890_v45 }
  0x56   :  { %886 = vmatpush.bf16.msra.mxu3 %v2893_v48 }
  0x57   :  { %848 = vmatpush.bf16.msra.mxu0 %v2897_v52 }
  0x58   :  { %861 = vmatpush.bf16.msra.mxu1 %v2900_v56 }
  0x59   :  { %874 = vmatpush.bf16.msra.mxu2 %v2902_v57 }
  0x5a   :  { %887 = vmatpush.bf16.msra.mxu3 %v2905_v60 }
  0x5b   :  { %849 = vmatpush.bf16.msra.mxu0 %v2910_v0 }
  0x5c   :  { %862 = vmatpush.bf16.msra.mxu1 %v2913_v4 }
  0x5d   :  { %875 = vmatpush.bf16.msra.mxu2 %v2915_v5 }
  0x5e   :  { %888 = vmatpush.bf16.msra.mxu3 %v2917_v9 }
  0x5f   :  { %850 = vmatpush.bf16.msra.mxu0 %v2921_v13 }
  0x60   :  { %863 = vmatpush.bf16.msra.mxu1 %v2923_v14 }
  0x61   :  { %876 = vmatpush.bf16.msra.mxu2 %v2926_v20 }
  0x62   :  { %889 = vmatpush.bf16.msra.mxu3 %v2929_v25 }
  0x63   :  { %851 = vmatpush.bf16.msra.mxu0 %v2933_v37 }
  0x64   :  { %864 = vmatpush.bf16.msra.mxu1 %v2935_v38 }
  0x65   :  { %877 = vmatpush.bf16.msra.mxu2 %v2938_v41 }
  0x66   :  { %890 = vmatpush.bf16.msra.mxu3 %v2941_v47 }
  0x67   :  { %852 = vmatpush.bf16.msra.mxu0 %v2945_v58 }
  0x68   :  { %865 = vmatpush.bf16.msra.mxu1 %v2947_v59 }
  0x69   :  { %878 = vmatpush.bf16.msra.mxu2 %v2953_v62 }
  0x6a   :  { %891 = vmatpush.bf16.msra.mxu3 %v2956_v1 }
  0xa7   :  { %v334_v51 = vpop.f32.mrf.mxu0 }
  0xa8   :  { %v348_v63 = vpop.f32.mrf.mxu1  ;;  %v335_v2 = vadd.f32 %v2297_v61, %v334_v51 }
  0xaa   :  { %v349_v8 = vadd.f32 %v348_v63, %v335_v2 }
  0xaf   :  { %v362_v3 = vpop.f32.mrf.mxu2  ;;  %v336_v7 = vpop.f32.mrf.mxu0 }
  0xb0   :  { %v376_v6 = vpop.f32.mrf.mxu3  ;;  %v337_v10 = vadd.f32 %v2297_v61, %v336_v7  ;;  %v350_v11 = vpop.f32.mrf.mxu1  ;;  %v363_v12 = vadd.f32 %v362_v3, %v349_v8 }
  0xb2   :  { %v351_v15 = vadd.f32 %v350_v11, %v337_v10  ;;  %v377_v23 = vadd.f32 %v376_v6, %v363_v12 }
  0xb7   :  { %v364_v16 = vpop.f32.mrf.mxu2 }
  0xb8   :  { %v365_v19 = vadd.f32 %v364_v16, %v351_v15  ;;  %v378_v21 = vpop.f32.mrf.mxu3 }
  0xba   :  { %v379_v24 = vadd.f32 %v378_v21, %v365_v19 }
  0xbc   :  { %v381_v28 = vpack.c.bf16 %v379_v24, %v377_v23 }
  0xbe   :  { %592 = vmatmul.bf16.vlgmr.msrb.gmra.mxu0 %v381_v28  ;;  %606 = vmatmul.bf16.vlgmr.msrb.gmra.mxu1 %v381_v28 }
  0xbf   :  { %620 = vmatmul.bf16.vlgmr.msrb.gmra.mxu2 %v381_v28  ;;  %634 = vmatmul.bf16.vlgmr.msrb.gmra.mxu3 %v381_v28 }
  0xc0   :  { %998 = vmatpush.bf16.msrb.mxu0 %v2863_v17  ;;  %1011 = vmatpush.bf16.msrb.mxu1 %v2865_v18 }
  0xc1   :  { %1024 = vmatpush.bf16.msrb.mxu2 %v2867_v22  ;;  %1037 = vmatpush.bf16.msrb.mxu3 %v2871_v26 }
  0xc4   :  { %999 = vmatpush.bf16.msrb.mxu0 %v2873_v27  ;;  %1012 = vmatpush.bf16.msrb.mxu1 %v2876_v31 }
  0xc5   :  { %1025 = vmatpush.bf16.msrb.mxu2 %v2879_v35  ;;  %1038 = vmatpush.bf16.msrb.mxu3 %v2881_v36 }
  0xc8   :  { %1000 = vmatpush.bf16.msrb.mxu0 %v2885_v40  ;;  %1013 = vmatpush.bf16.msrb.mxu1 %v2888_v44 }
  0xc9   :  { %1026 = vmatpush.bf16.msrb.mxu2 %v2890_v45  ;;  %1039 = vmatpush.bf16.msrb.mxu3 %v2893_v48 }
  0xcc   :  { %1001 = vmatpush.bf16.msrb.mxu0 %v2897_v52  ;;  %1014 = vmatpush.bf16.msrb.mxu1 %v2900_v56 }
  0xcd   :  { %1027 = vmatpush.bf16.msrb.mxu2 %v2902_v57  ;;  %1040 = vmatpush.bf16.msrb.mxu3 %v2905_v60 }
  0xce   :  { %853 = vmatmul.bf16.vlgmr.msra.gmra.mxu0 %v2483_v55  ;;  %866 = vmatmul.bf16.vlgmr.msra.gmra.mxu1 %v2483_v55 }
  0xcf   :  { %879 = vmatmul.bf16.vlgmr.msra.gmra.mxu2 %v2483_v55  ;;  %892 = vmatmul.bf16.vlgmr.msra.gmra.mxu3 %v2483_v55 }
  0xd0   :  { %1002 = vmatpush.bf16.msrb.mxu0 %v2910_v0  ;;  %1015 = vmatpush.bf16.msrb.mxu1 %v2913_v4 }
  0xd1   :  { %1028 = vmatpush.bf16.msrb.mxu2 %v2915_v5  ;;  %1041 = vmatpush.bf16.msrb.mxu3 %v2917_v9 }
  0xd4   :  { %1003 = vmatpush.bf16.msrb.mxu0 %v2921_v13  ;;  %1016 = vmatpush.bf16.msrb.mxu1 %v2923_v14 }
  0xd5   :  { %1029 = vmatpush.bf16.msrb.mxu2 %v2926_v20  ;;  %1042 = vmatpush.bf16.msrb.mxu3 %v2929_v25 }
  0xd8   :  { %1004 = vmatpush.bf16.msrb.mxu0 %v2933_v37  ;;  %1017 = vmatpush.bf16.msrb.mxu1 %v2935_v38 }
  0xd9   :  { %1030 = vmatpush.bf16.msrb.mxu2 %v2938_v41  ;;  %1043 = vmatpush.bf16.msrb.mxu3 %v2941_v47 }
  0xdc   :  { %1005 = vmatpush.bf16.msrb.mxu0 %v2945_v58  ;;  %1018 = vmatpush.bf16.msrb.mxu1 %v2947_v59 }
  0xdd   :  { %1031 = vmatpush.bf16.msrb.mxu2 %v2953_v62  ;;  %1044 = vmatpush.bf16.msrb.mxu3 %v2956_v1 }
  0xe0   :  { %1162 = vmatpush.bf16.msra.mxu0 %v2863_v17  ;;  %1175 = vmatpush.bf16.msra.mxu1 %v2865_v18 }
  0xe1   :  { %1188 = vmatpush.bf16.msra.mxu2 %v2867_v22  ;;  %1201 = vmatpush.bf16.msra.mxu3 %v2871_v26 }
  0xe4   :  { %1163 = vmatpush.bf16.msra.mxu0 %v2873_v27  ;;  %1176 = vmatpush.bf16.msra.mxu1 %v2876_v31 }
  0xe5   :  { %1189 = vmatpush.bf16.msra.mxu2 %v2879_v35  ;;  %1202 = vmatpush.bf16.msra.mxu3 %v2881_v36 }
  0xe8   :  { %1164 = vmatpush.bf16.msra.mxu0 %v2885_v40  ;;  %1177 = vmatpush.bf16.msra.mxu1 %v2888_v44 }
  0xe9   :  { %1190 = vmatpush.bf16.msra.mxu2 %v2890_v45  ;;  %1203 = vmatpush.bf16.msra.mxu3 %v2893_v48 }
  0xec   :  { %1165 = vmatpush.bf16.msra.mxu0 %v2897_v52  ;;  %1178 = vmatpush.bf16.msra.mxu1 %v2900_v56 }
  0xed   :  { %1191 = vmatpush.bf16.msra.mxu2 %v2902_v57  ;;  %1204 = vmatpush.bf16.msra.mxu3 %v2905_v60 }
  0xf0   :  { %1166 = vmatpush.bf16.msra.mxu0 %v2910_v0  ;;  %1179 = vmatpush.bf16.msra.mxu1 %v2913_v4 }
  0xf1   :  { %1192 = vmatpush.bf16.msra.mxu2 %v2915_v5  ;;  %1205 = vmatpush.bf16.msra.mxu3 %v2917_v9 }
  0xf4   :  { %1167 = vmatpush.bf16.msra.mxu0 %v2921_v13  ;;  %1180 = vmatpush.bf16.msra.mxu1 %v2923_v14 }
  0xf5   :  { %1193 = vmatpush.bf16.msra.mxu2 %v2926_v20  ;;  %1206 = vmatpush.bf16.msra.mxu3 %v2929_v25 }
  0xf8   :  { %1168 = vmatpush.bf16.msra.mxu0 %v2933_v37  ;;  %1181 = vmatpush.bf16.msra.mxu1 %v2935_v38 }
  0xf9   :  { %1194 = vmatpush.bf16.msra.mxu2 %v2938_v41  ;;  %1207 = vmatpush.bf16.msra.mxu3 %v2941_v47 }
  0xfc   :  { %1169 = vmatpush.bf16.msra.mxu0 %v2945_v58  ;;  %1182 = vmatpush.bf16.msra.mxu1 %v2947_v59 }
  0xfd   :  { %1195 = vmatpush.bf16.msra.mxu2 %v2953_v62  ;;  %1208 = vmatpush.bf16.msra.mxu3 %v2956_v1 }
 0x13b   :  { %v593_v33 = vpop.f32.mrf.mxu0  ;;  %v607_v34 = vpop.f32.mrf.mxu1 }
 0x13c   :  { %v594_v39 = vadd.f32 %v593_v33, %v416_v30  ;;  %v608_v42 = vadd.f32 %v607_v34, %v417_v32 }
 0x13e   :  { %640 = vst [vmem:[#allocation2 + $0x30] sm:$0xff] %v594_v39 }
 0x13f   :  { %641 = vst [vmem:[#allocation2] sm:$0xff] %v608_v42 }
 0x142   :  { %v621_v49 = vpop.f32.mrf.mxu2  ;;  %v635_v50 = vpop.f32.mrf.mxu3 }
 0x143   :  { %v622_v51 = vadd.f32 %v621_v49, %v418_v43  ;;  %v636_v53 = vadd.f32 %v635_v50, %v419_v46  ;;  %v595_v54 = vpop.f32.mrf.mxu0  ;;  %v609_v55 = vpop.f32.mrf.mxu1 }
 0x144   :  { %v596_v61 = vadd.f32 %v595_v54, %v416_v30  ;;  %v610_v63 = vadd.f32 %v609_v55, %v417_v32 }
 0x145   :  { %642 = vst [vmem:[#allocation2 + $0x18] sm:$0xff] %v622_v51  ;;  %v681_v8 = vld [vmem:[#allocation2 + $0x30] sm:$0x3] }
 0x146   :  { %643 = vst [vmem:[#allocation2 + $0x10] sm:$0xff] %v636_v53  ;;  %v682_v11 = vld [vmem:[#allocation2] sm:$0x3] }
 0x147   :  { %644 = vst [vmem:[#allocation2 + $0x8] sm:$0x3] %v596_v61 }
 0x148   :  { %645 = vst [vmem:[#allocation2 + $0x20] sm:$0x3] %v610_v63 }
 0x14a   :  { %v623_v2 = vpop.f32.mrf.mxu2  ;;  %v637_v3 = vpop.f32.mrf.mxu3 }
 0x14b   :  { %v624_v6 = vadd.f32 %v623_v2, %v418_v43  ;;  %v638_v7 = vadd.f32 %v637_v3, %v419_v46  ;;  %v854_v10 = vpop.f32.mrf.mxu0  ;;  %v867_v12 = vpop.f32.mrf.mxu1 }
 0x14c   :  { %v897_v15 = vadd.f32 %v854_v10, %v681_v8  ;;  %v898_v16 = vadd.f32 %v867_v12, %v682_v11  ;;  %v683_v51 = vld [vmem:[#allocation2 + $0x18] sm:$0x3] }
 0x14d   :  { %646 = vst [vmem:[#allocation2 + $0x28] sm:$0x3] %v624_v6  ;;  %v684_v24 = vld [vmem:[#allocation2 + $0x10] sm:$0x3] }
 0x14e   :  { %647 = vst [vmem:[#allocation2 + $0x38] sm:$0x3] %v638_v7  ;;  %v2173_v19 = vmul.f32 -1.442695, %v897_v15  ;;  %v2174_v21 = vmul.f32 -1.442695, %v898_v16 }
 0x150   :  { %2300 = vpow2.f32 %v2173_v19 }
 0x151   :  { %2302 = vpow2.f32 %v2174_v21 }
 0x152   :  { %v880_v23 = vpop.f32.mrf.mxu2  ;;  %v893_v28 = vpop.f32.mrf.mxu3 }
 0x153   :  { %v900_v29 = vadd.f32 %v893_v28, %v684_v24  ;;  %v856_v30 = vpop.f32.mrf.mxu0  ;;  %v869_v32 = vpop.f32.mrf.mxu1  ;;  %v899_v55 = vadd.f32 %v880_v23, %v683_v51 }
 0x155   :  { %v2175_v33 = vmul.f32 -1.442695, %v900_v29 }
 0x156   :  { %v2301_v34 = vpop.eup %2300 }
 0x157   :  { %v2303_v39 = vpop.eup %2302  ;;  %v904_v42 = vadd.f32 1.0, %v2301_v34  ;;  %2304 = vpow2.f32 %v2175_v33 }
 0x158   :  { %v923_v43 = vadd.f32 1.0, %v2303_v39 }
 0x159   :  { %2306 = vrcp.f32 %v904_v42  ;;  %v916_v7 = vand.u32 2147483648, %v904_v42  ;;  %v914_v11 = vand.u32 2147483647, %v904_v42  ;;  %vm910_vm2 = vweird.f32 %v904_v42 }
 0x15a   :  { %2308 = vrcp.f32 %v923_v43  ;;  %v895_v46 = vpop.f32.mrf.mxu3  ;;  %v882_v49 = vpop.f32.mrf.mxu2  ;;  %v935_v8 = vand.u32 2147483648, %v923_v43  ;;  %v933_v15 = vand.u32 2147483647, %v923_v43  ;;  %vm929_vm3 = vweird.f32 %v923_v43 }
 0x15b   :  { %v917_v21 = vor.u32 1.1754944e-38, %v916_v7  ;;  %vm915_vm5 = vcmp.eq.f32.partialorder %v914_v11, 8.507059e+37  ;;  %v993_v11 = vld [vmem:[#allocation2 + $0x30] sm:$0xc] }
 0x15c   :  { %v936_v28 = vor.u32 1.1754944e-38, %v935_v8  ;;  %vm934_vm7 = vcmp.eq.f32.partialorder %v933_v15, 8.507059e+37 }
 0x15d   :  { %v2305_v50 = vpop.eup %2304 }
 0x15e   :  { %v943_v53 = vadd.f32 1.0, %v2305_v50 }
 0x15f   :  { %v2307_v54 = vpop.eup %2306 }
 0x160   :  { %v2309_v61 = vpop.eup %2308  ;;  %v906_v63 = vmul.f32 %v2307_v54, %v904_v42  ;;  %2310 = vrcp.f32 %v943_v53  ;;  %vm911_vm0 = vweird.f32 %v2307_v54  ;;  %vm949_vm9 = vweird.f32 %v943_v53 }
 0x161   :  { %v925_v2 = vmul.f32 %v2309_v61, %v923_v43  ;;  %2312 = vtanh.f32 %v899_v55  ;;  %vm930_vm1 = vweird.f32 %v2309_v61  ;;  %vm912_vm4 = vmor %vm910_vm2, %vm911_vm0  ;;  %v955_v43 = vand.u32 2147483648, %v943_v53 }
 0x162   :  { %v907_v3 = vsub.f32 1.0, %v906_v63  ;;  %vm931_vm6 = vmor %vm929_vm3, %vm930_vm1 }
 0x163   :  { %v926_v6 = vsub.f32 1.0, %v925_v2  ;;  %v956_v63 = vor.u32 1.1754944e-38, %v955_v43 }
 0x164   :  { %v908_v10 = vmul.f32 %v2307_v54, %v907_v3 }
 0x165   :  { %v927_v12 = vmul.f32 %v2309_v61, %v926_v6 }
 0x166   :  { %v2311_v16 = vpop.eup %2310  ;;  %v909_v19 = vadd.f32 %v2307_v54, %v908_v10 }
 0x167   :  { %v928_v23 = vadd.f32 %v2309_v61, %v927_v12  ;;  %v945_v24 = vmul.f32 %v2311_v16, %v943_v53  ;;  %v2313_v30 = vpop.eup %2312  ;;  %vm950_vm8 = vweird.f32 %v2311_v16  ;;  %v994_v12 = vld [vmem:[#allocation2] sm:$0xc] }
 0x168   :  { %v913_v29 = vsel %vm912_vm4, %v2307_v54, %v909_v19  ;;  %v953_v54 = vand.u32 2147483647, %v943_v53  ;;  %vm951_vm10 = vmor %vm949_vm9, %vm950_vm8  ;;  %vm1133_vm8 = vcmask 1043458   ;;  %vm965_vm9 = vcmask 1041408  }
 0x169   :  { %v918_v32 = vsel %vm915_vm5, %v917_v21, %v913_v29  ;;  %v932_v33 = vsel %vm931_vm6, %v2309_v61, %v928_v23  ;;  %v946_v34 = vsub.f32 1.0, %v945_v24 }
 0x16a   :  { %v937_v39 = vsel %vm934_vm7, %v936_v28, %v932_v33  ;;  %v960_v46 = vmul.f32 %v2313_v30, %v918_v32  ;;  %vm954_vm11 = vcmp.eq.f32.partialorder %v953_v54, 8.507059e+37  ;;  %v996_v32 = vld [vmem:[#allocation2 + $0x10] sm:$0xc] }
 0x16b   :  { %v959_v49 = vmul.f32 0.0, %v937_v39  ;;  %v947_v50 = vmul.f32 %v2311_v16, %v946_v34 }
 0x16d   :  { %v3029_v51 = vadd.f32 %v960_v46, %v959_v49  ;;  %v948_v42 = vadd.f32 %v2311_v16, %v947_v50 }
 0x16f   :  { %2314 = vtanh.f32 %v3029_v51  ;;  %v952_v55 = vsel %vm951_vm10, %v2311_v16, %v948_v42 }
 0x170   :  { %v957_v2 = vsel %vm954_vm11, %v956_v63, %v952_v55  ;;  %v995_v63 = vld [vmem:[#allocation2 + $0x18] sm:$0xc] }
 0x175   :  { %v2315_v61 = vpop.eup %2314 }
 0x176   :  { %v3032_v3 = vmul.f32 %v2315_v61, %v957_v2 }
 0x178   :  { %v997_v6 = vpack.c.bf16 %v3032_v3, %v3032_v3 }
 0x17a   :  { %1006 = vmatmul.bf16.vlgmr.msrb.gmra.mxu0 %v997_v6  ;;  %1019 = vmatmul.bf16.vlgmr.msrb.gmra.mxu1 %v997_v6 }
 0x17b   :  { %1032 = vmatmul.bf16.vlgmr.msrb.gmra.mxu2 %v997_v6  ;;  %1045 = vmatmul.bf16.vlgmr.msrb.gmra.mxu3 %v997_v6 }
 0x17c   :  { %1326 = vmatpush.bf16.msrb.mxu0 %v2863_v17  ;;  %1339 = vmatpush.bf16.msrb.mxu1 %v2865_v18 }
 0x17d   :  { %1352 = vmatpush.bf16.msrb.mxu2 %v2867_v22  ;;  %1365 = vmatpush.bf16.msrb.mxu3 %v2871_v26 }
 0x180   :  { %1327 = vmatpush.bf16.msrb.mxu0 %v2873_v27  ;;  %1340 = vmatpush.bf16.msrb.mxu1 %v2876_v31 }
 0x181   :  { %1353 = vmatpush.bf16.msrb.mxu2 %v2879_v35  ;;  %1366 = vmatpush.bf16.msrb.mxu3 %v2881_v36 }
 0x184   :  { %1328 = vmatpush.bf16.msrb.mxu0 %v2885_v40  ;;  %1341 = vmatpush.bf16.msrb.mxu1 %v2888_v44 }
 0x185   :  { %1354 = vmatpush.bf16.msrb.mxu2 %v2890_v45  ;;  %1367 = vmatpush.bf16.msrb.mxu3 %v2893_v48 }
 0x188   :  { %1329 = vmatpush.bf16.msrb.mxu0 %v2897_v52  ;;  %1342 = vmatpush.bf16.msrb.mxu1 %v2900_v56 }
 0x189   :  { %1355 = vmatpush.bf16.msrb.mxu2 %v2902_v57  ;;  %1368 = vmatpush.bf16.msrb.mxu3 %v2905_v60 }
 0x18c   :  { %1330 = vmatpush.bf16.msrb.mxu0 %v2910_v0  ;;  %1343 = vmatpush.bf16.msrb.mxu1 %v2913_v4 }
 0x18d   :  { %1356 = vmatpush.bf16.msrb.mxu2 %v2915_v5  ;;  %1369 = vmatpush.bf16.msrb.mxu3 %v2917_v9 }
 0x190   :  { %1331 = vmatpush.bf16.msrb.mxu0 %v2921_v13  ;;  %1344 = vmatpush.bf16.msrb.mxu1 %v2923_v14 }
 0x191   :  { %1357 = vmatpush.bf16.msrb.mxu2 %v2926_v20  ;;  %1370 = vmatpush.bf16.msrb.mxu3 %v2929_v25 }
 0x194   :  { %1332 = vmatpush.bf16.msrb.mxu0 %v2933_v37  ;;  %1345 = vmatpush.bf16.msrb.mxu1 %v2935_v38 }
 0x195   :  { %1358 = vmatpush.bf16.msrb.mxu2 %v2938_v41  ;;  %1371 = vmatpush.bf16.msrb.mxu3 %v2941_v47 }
 0x198   :  { %1333 = vmatpush.bf16.msrb.mxu0 %v2945_v58  ;;  %1346 = vmatpush.bf16.msrb.mxu1 %v2947_v59 }
 0x199   :  { %1359 = vmatpush.bf16.msrb.mxu2 %v2953_v62  ;;  %1372 = vmatpush.bf16.msrb.mxu3 %v2956_v1 }
 0x1f7   :  { %v1007_v53 = vpop.f32.mrf.mxu0  ;;  %v1020_v7 = vpop.f32.mrf.mxu1 }
 0x1f8   :  { %v1054_v8 = vrot.slane %v1007_v53, 6  ;;  %v1055_v10 = vrot.slane %v1020_v7, 6 }
 0x1fa   :  { %v1062_v15 = vadd.f32 %v1054_v8, %v993_v11  ;;  %v1063_v16 = vadd.f32 %v1055_v10, %v994_v12 }
 0x1fc   :  { %v2176_v19 = vmul.f32 -1.442695, %v1062_v15  ;;  %v2177_v21 = vmul.f32 -1.442695, %v1063_v16 }
 0x1fe   :  { %2316 = vpow2.f32 %v2176_v19  ;;  %v1033_v23 = vpop.f32.mrf.mxu2  ;;  %v1046_v24 = vpop.f32.mrf.mxu3 }
 0x1ff   :  { %2318 = vpow2.f32 %v2177_v21  ;;  %v1057_v28 = vrot.slane %v1046_v24, 6  ;;  %v1009_v29 = vpop.f32.mrf.mxu0  ;;  %v1022_v30 = vpop.f32.mrf.mxu1  ;;  %v1056_v54 = vrot.slane %v1033_v23, 6 }
 0x201   :  { %v1065_v33 = vadd.f32 %v1057_v28, %v996_v32  ;;  %v1064_v6 = vadd.f32 %v1056_v54, %v995_v63 }
 0x203   :  { %v2178_v34 = vmul.f32 -1.442695, %v1065_v33  ;;  %v1125_v33 = vrot.slane %v3029_v51, 6 }
 0x204   :  { %v2317_v39 = vpop.eup %2316 }
 0x205   :  { %v2319_v46 = vpop.eup %2318  ;;  %v1069_v49 = vadd.f32 1.0, %v2317_v39  ;;  %2320 = vpow2.f32 %v2178_v34 }
 0x206   :  { %v1088_v50 = vadd.f32 1.0, %v2319_v46  ;;  %v1035_v42 = vpop.f32.mrf.mxu2  ;;  %v1048_v43 = vpop.f32.mrf.mxu3 }
 0x207   :  { %2322 = vrcp.f32 %v1069_v49  ;;  %v1081_v12 = vand.u32 2147483648, %v1069_v49  ;;  %v1079_v19 = vand.u32 2147483647, %v1069_v49  ;;  %vm1075_vm14 = vweird.f32 %v1069_v49 }
 0x208   :  { %2324 = vrcp.f32 %v1088_v50  ;;  %v1100_v15 = vand.u32 2147483648, %v1088_v50  ;;  %v1098_v23 = vand.u32 2147483647, %v1088_v50  ;;  %vm1094_vm15 = vweird.f32 %v1088_v50 }
 0x209   :  { %v1082_v29 = vor.u32 1.1754944e-38, %v1081_v12  ;;  %vm1080_vm2 = vcmp.eq.f32.partialorder %v1079_v19, 8.507059e+37 }
 0x20a   :  { %v1101_v34 = vor.u32 1.1754944e-38, %v1100_v15  ;;  %vm1099_vm3 = vcmp.eq.f32.partialorder %v1098_v23, 8.507059e+37 }
 0x20b   :  { %v2321_v55 = vpop.eup %2320 }
 0x20c   :  { %v1108_v61 = vadd.f32 1.0, %v2321_v55 }
 0x20d   :  { %v2323_v2 = vpop.eup %2322 }
 0x20e   :  { %v2325_v53 = vpop.eup %2324  ;;  %v1071_v7 = vmul.f32 %v2323_v2, %v1069_v49  ;;  %2326 = vrcp.f32 %v1108_v61  ;;  %vm1076_vm12 = vweird.f32 %v2323_v2  ;;  %vm1114_vm5 = vweird.f32 %v1108_v61 }
 0x20f   :  { %v1090_v8 = vmul.f32 %v2325_v53, %v1088_v50  ;;  %2328 = vtanh.f32 %v1064_v6  ;;  %vm1095_vm13 = vweird.f32 %v2325_v53  ;;  %vm1077_vm0 = vmor %vm1075_vm14, %vm1076_vm12  ;;  %v1118_v51 = vand.u32 2147483647, %v1108_v61 }
 0x210   :  { %v1072_v10 = vsub.f32 1.0, %v1071_v7  ;;  %vm1096_vm1 = vmor %vm1094_vm15, %vm1095_vm13 }
 0x211   :  { %v1091_v11 = vsub.f32 1.0, %v1090_v8  ;;  %v1120_v8 = vand.u32 2147483648, %v1108_v61  ;;  %vm1119_vm7 = vcmp.eq.f32.partialorder %v1118_v51, 8.507059e+37 }
 0x212   :  { %v1073_v16 = vmul.f32 %v2323_v2, %v1072_v10 }
 0x213   :  { %v1092_v21 = vmul.f32 %v2325_v53, %v1091_v11  ;;  %v1121_v10 = vor.u32 1.1754944e-38, %v1120_v8 }
 0x214   :  { %v2327_v24 = vpop.eup %2326  ;;  %v1074_v28 = vadd.f32 %v2323_v2, %v1073_v16 }
 0x215   :  { %v1093_v30 = vadd.f32 %v2325_v53, %v1092_v21  ;;  %v1110_v32 = vmul.f32 %v2327_v24, %v1108_v61  ;;  %v2329_v46 = vpop.eup %2328  ;;  %vm1115_vm4 = vweird.f32 %v2327_v24  ;;  %v964_v61 = vmul.f32 %v3032_v3, %v3032_v3 }
 0x216   :  { %v1078_v39 = vsel %vm1077_vm0, %v2323_v2, %v1074_v28  ;;  %vm1116_vm6 = vmor %vm1114_vm5, %vm1115_vm4 }
 0x217   :  { %v1083_v42 = vsel %vm1080_vm2, %v1082_v29, %v1078_v39  ;;  %v1097_v43 = vsel %vm1096_vm1, %v2325_v53, %v1093_v30  ;;  %v1111_v54 = vsub.f32 1.0, %v1110_v32  ;;  %v966_v23 = vsel %vm965_vm9, %v964_v61, 0.0  ;;  %v3122_v32 = vld [vmem:[%s3237_s6] ss:$0 sm:$0xff]  ;;  %s2484_s6 = smov 2  }
 0x218   :  { %v1102_v55 = vsel %vm1099_vm3, %v1101_v34, %v1097_v43  ;;  %v1128_v63 = vmul.f32 %v2329_v46, %v1083_v42  ;;  %v1156_v34 = vld [vmem:[#allocation2 + $0x18] sm:$0x30] }
 0x219   :  { %v1127_v6 = vmul.f32 %v1125_v33, %v1102_v55  ;;  %v1112_v49 = vmul.f32 %v2327_v24, %v1111_v54 }
 0x21b   :  { %v3069_v50 = vadd.f32 %v1128_v63, %v1127_v6  ;;  %v1113_v7 = vadd.f32 %v2327_v24, %v1112_v49 }
 0x21d   :  { %2330 = vtanh.f32 %v3069_v50  ;;  %v1117_v2 = vsel %vm1116_vm6, %v2327_v24, %v1113_v7  ;;  %v1289_v61 = vrot.slane %v3069_v50, 6 }
 0x21e   :  { %v1122_v11 = vsel %vm1119_vm7, %v1121_v10, %v1117_v2 }
 0x223   :  { %v2331_v53 = vpop.eup %2330 }
 0x224   :  { %v3072_v12 = vmul.f32 %v2331_v53, %v1122_v11 }
 0x226   :  { %v1132_v15 = vmul.f32 %v3072_v12, %v3072_v12  ;;  %v1158_v16 = vpack.c.bf16 %v3072_v12, %v3072_v12 }
 0x228   :  { %v1134_v19 = vsel %vm1133_vm8, %v1132_v15, 0.0  ;;  %v1160_v21 = vrot.slane %v1158_v16, 1 }
 0x229   :  { %1135 = vadd.xlane.f32.xlu0 %v1134_v19 }
 0x22a   :  { %1170 = vmatmul.bf16.vlgmr.msra.gmra.mxu0 %v1160_v21  ;;  %1183 = vmatmul.bf16.vlgmr.msra.gmra.mxu1 %v1160_v21 }
 0x22b   :  { %1196 = vmatmul.bf16.vlgmr.msra.gmra.mxu2 %v1160_v21  ;;  %1209 = vmatmul.bf16.vlgmr.msra.gmra.mxu3 %v1160_v21 }
 0x22c   :  { %1490 = vmatpush.bf16.msra.mxu0 %v2863_v17  ;;  %1503 = vmatpush.bf16.msra.mxu1 %v2865_v18 }
 0x22d   :  { %1516 = vmatpush.bf16.msra.mxu2 %v2867_v22  ;;  %1529 = vmatpush.bf16.msra.mxu3 %v2871_v26 }
 0x230   :  { %1491 = vmatpush.bf16.msra.mxu0 %v2873_v27  ;;  %1504 = vmatpush.bf16.msra.mxu1 %v2876_v31 }
 0x231   :  { %967 = vadd.xlane.f32.xlu0 %v966_v23  ;;  %1517 = vmatpush.bf16.msra.mxu2 %v2879_v35 }
 0x232   :  { %1530 = vmatpush.bf16.msra.mxu3 %v2881_v36  ;;  %v1154_v36 = vld [vmem:[#allocation2 + $0x30] sm:$0x30] }
 0x234   :  { %1492 = vmatpush.bf16.msra.mxu0 %v2885_v40  ;;  %1505 = vmatpush.bf16.msra.mxu1 %v2888_v44  ;;  %v1155_v40 = vld [vmem:[#allocation2] sm:$0x30] }
 0x235   :  { %1518 = vmatpush.bf16.msra.mxu2 %v2890_v45 }
 0x236   :  { %1531 = vmatpush.bf16.msra.mxu3 %v2893_v48 }
 0x238   :  { %1493 = vmatpush.bf16.msra.mxu0 %v2897_v52  ;;  %1506 = vmatpush.bf16.msra.mxu1 %v2900_v56 }
 0x239   :  { %1519 = vmatpush.bf16.msra.mxu2 %v2902_v57 }
 0x23a   :  { %1532 = vmatpush.bf16.msra.mxu3 %v2905_v60 }
 0x23c   :  { %1494 = vmatpush.bf16.msra.mxu0 %v2910_v0  ;;  %1507 = vmatpush.bf16.msra.mxu1 %v2913_v4 }
 0x23d   :  { %1520 = vmatpush.bf16.msra.mxu2 %v2915_v5 }
 0x23e   :  { %1533 = vmatpush.bf16.msra.mxu3 %v2917_v9 }
 0x240   :  { %1495 = vmatpush.bf16.msra.mxu0 %v2921_v13  ;;  %1508 = vmatpush.bf16.msra.mxu1 %v2923_v14  ;;  %v1157_v14 = vld [vmem:[#allocation2 + $0x10] sm:$0x30] }
 0x241   :  { %1521 = vmatpush.bf16.msra.mxu2 %v2926_v20 }
 0x242   :  { %1534 = vmatpush.bf16.msra.mxu3 %v2929_v25 }
 0x244   :  { %1496 = vmatpush.bf16.msra.mxu0 %v2933_v37  ;;  %1509 = vmatpush.bf16.msra.mxu1 %v2935_v38 }
 0x245   :  { %1522 = vmatpush.bf16.msra.mxu2 %v2938_v41 }
 0x246   :  { %1535 = vmatpush.bf16.msra.mxu3 %v2941_v47 }
 0x248   :  { %1497 = vmatpush.bf16.msra.mxu0 %v2945_v58  ;;  %1510 = vmatpush.bf16.msra.mxu1 %v2947_v59 }
 0x249   :  { %1523 = vmatpush.bf16.msra.mxu2 %v2953_v62 }
 0x24a   :  { %1536 = vmatpush.bf16.msra.mxu3 %v2956_v1 }
 0x29c   :  { %v3114_v17 = vpop.xlane.xlu0 %1135 }
 0x2a4   :  { %v968_v18 = vpop.xlane.xlu0 %967 }
 0x2a5   :  { %v969_v22 = vadd.f32 1e-12, %v968_v18 }
 0x2a7   :  { %2332 = vrsqrt.f32 %v969_v22  ;;  %v1171_v26 = vpop.f32.mrf.mxu0  ;;  %v1184_v27 = vpop.f32.mrf.mxu1  ;;  %vm976_vm11 = vweird.f32 %v969_v22 }
 0x2a8   :  { %v1218_v31 = vrot.slane %v1171_v26, 4  ;;  %v1219_v35 = vrot.slane %v1184_v27, 4 }
 0x2aa   :  { %v1226_v44 = vadd.f32 %v1218_v31, %v1154_v36  ;;  %v1227_v45 = vadd.f32 %v1219_v35, %v1155_v40 }
 0x2ac   :  { %v2179_v48 = vmul.f32 -1.442695, %v1226_v44  ;;  %v2180_v52 = vmul.f32 -1.442695, %v1227_v45 }
 0x2ad   :  { %v2333_v56 = vpop.eup %2332 }
 0x2ae   :  { %v971_v57 = vmul.f32 %v2333_v56, %v969_v22  ;;  %2334 = vpow2.f32 %v2179_v48  ;;  %v1197_v60 = vpop.f32.mrf.mxu2  ;;  %v1210_v0 = vpop.f32.mrf.mxu3  ;;  %vm977_vm10 = vweird.f32 %v2333_v56 }
 0x2af   :  { %2336 = vpow2.f32 %v2180_v52  ;;  %v1221_v4 = vrot.slane %v1210_v0, 4  ;;  %v1173_v5 = vpop.f32.mrf.mxu0  ;;  %v1186_v9 = vpop.f32.mrf.mxu1  ;;  %vm978_vm12 = vmor %vm976_vm11, %vm977_vm10  ;;  %v1220_v28 = vrot.slane %v1197_v60, 4  ;;  %vm1297_vm11 = vcmask 1045508  }
 0x2b0   :  { %v972_v13 = vmul.f32 %v2333_v56, %v971_v57 }
 0x2b1   :  { %v1229_v20 = vadd.f32 %v1221_v4, %v1157_v14  ;;  %v1228_v43 = vadd.f32 %v1220_v28, %v1156_v34 }
 0x2b2   :  { %v973_v25 = vmul.f32 0.5, %v972_v13 }
 0x2b3   :  { %v2181_v37 = vmul.f32 -1.442695, %v1229_v20 }
 0x2b4   :  { %v2335_v38 = vpop.eup %2334  ;;  %v974_v41 = vsub.f32 1.5, %v973_v25 }
 0x2b5   :  { %v2337_v47 = vpop.eup %2336  ;;  %v1233_v58 = vadd.f32 1.0, %v2335_v38  ;;  %2338 = vpow2.f32 %v2181_v37 }
 0x2b6   :  { %v1252_v59 = vadd.f32 1.0, %v2337_v47  ;;  %v1199_v62 = vpop.f32.mrf.mxu2  ;;  %v1212_v1 = vpop.f32.mrf.mxu3  ;;  %v975_v24 = vmul.f32 %v2333_v56, %v974_v41  ;;  %v1318_v41 = vld [vmem:[#allocation2 + $0x30] sm:$0xc0]  ;;  %v1319_v47 = vld [vmem:[#allocation2] sm:$0xc0] }
 0x2b7   :  { %2340 = vrcp.f32 %v1233_v58  ;;  %v1245_v7 = vand.u32 2147483648, %v1233_v58  ;;  %v1243_v2 = vand.u32 2147483647, %v1233_v58  ;;  %vm1239_vm15 = vweird.f32 %v1233_v58 }
 0x2b8   :  { %2342 = vrcp.f32 %v1252_v59  ;;  %v979_v29 = vsel %vm978_vm12, %v2333_v56, %v975_v24  ;;  %v1264_v8 = vand.u32 2147483648, %v1252_v59  ;;  %v1262_v53 = vand.u32 2147483647, %v1252_v59 }
 0x2b9   :  { %v3117_v30 = vmul.f32 %v979_v29, %v3032_v3  ;;  %vm1258_vm0 = vweird.f32 %v1252_v59  ;;  %v1246_v16 = vor.u32 1.1754944e-38, %v1245_v7  ;;  %vm1244_vm3 = vcmp.eq.f32.partialorder %v1243_v2, 8.507059e+37 }
 0x2ba   :  { %v1265_v23 = vor.u32 1.1754944e-38, %v1264_v8  ;;  %vm1263_vm4 = vcmp.eq.f32.partialorder %v1262_v53, 8.507059e+37 }
 0x2bb   :  { %v2339_v33 = vpop.eup %2338  ;;  %v984_v46 = vmul.f32 %v3122_v32, %v3117_v30 }
 0x2bc   :  { %v1272_v39 = vadd.f32 1.0, %v2339_v33 }
 0x2bd   :  { %v2341_v42 = vpop.eup %2340  ;;  %v985_v63 = vsel %vm965_vm9, %v984_v46, 0.0  ;;  %v1321_v46 = vld [vmem:[#allocation2 + $0x10] sm:$0xc0] }
 0x2be   :  { %v2343_v54 = vpop.eup %2342  ;;  %v1235_v55 = vmul.f32 %v2341_v42, %v1233_v58  ;;  %2344 = vrcp.f32 %v1272_v39  ;;  %986 = vadd.xlane.f32.xlu0 %v985_v63  ;;  %vm1240_vm13 = vweird.f32 %v2341_v42  ;;  %v1284_v52 = vand.u32 2147483648, %v1272_v39 }
 0x2bf   :  { %v1254_v3 = vmul.f32 %v2343_v54, %v1252_v59  ;;  %2346 = vtanh.f32 %v1228_v43  ;;  %vm1259_vm14 = vweird.f32 %v2343_v54  ;;  %vm1241_vm1 = vmor %vm1239_vm15, %vm1240_vm13  ;;  %vm1278_vm6 = vweird.f32 %v1272_v39 }
 0x2c0   :  { %v1236_v6 = vsub.f32 1.0, %v1235_v55  ;;  %vm1260_vm2 = vmor %vm1258_vm0, %vm1259_vm14  ;;  %v1282_v50 = vand.u32 2147483647, %v1272_v39  ;;  %v1285_v57 = vor.u32 1.1754944e-38, %v1284_v52 }
 0x2c1   :  { %v1255_v49 = vsub.f32 1.0, %v1254_v3 }
 0x2c2   :  { %v1237_v51 = vmul.f32 %v2341_v42, %v1236_v6  ;;  %vm1283_vm10 = vcmp.eq.f32.partialorder %v1282_v50, 8.507059e+37 }
 0x2c3   :  { %v1256_v10 = vmul.f32 %v2343_v54, %v1255_v49 }
 0x2c4   :  { %v2345_v11 = vpop.eup %2344  ;;  %v1238_v15 = vadd.f32 %v2341_v42, %v1237_v51 }
 0x2c5   :  { %v1257_v19 = vadd.f32 %v2343_v54, %v1256_v10  ;;  %v1274_v21 = vmul.f32 %v2345_v11, %v1272_v39  ;;  %v2347_v22 = vpop.eup %2346  ;;  %vm1279_vm5 = vweird.f32 %v2345_v11  ;;  %v1320_v10 = vld [vmem:[#allocation2 + $0x18] sm:$0xc0] }
 0x2c6   :  { %v1242_v18 = vsel %vm1241_vm1, %v2341_v42, %v1238_v15  ;;  %vm1280_vm7 = vmor %vm1278_vm6, %vm1279_vm5 }
 0x2c7   :  { %v1247_v26 = vsel %vm1244_vm3, %v1246_v16, %v1242_v18  ;;  %v1261_v27 = vsel %vm1260_vm2, %v2343_v54, %v1257_v19  ;;  %v1275_v31 = vsub.f32 1.0, %v1274_v21 }
 0x2c8   :  { %v1266_v35 = vsel %vm1263_vm4, %v1265_v23, %v1261_v27  ;;  %v1292_v36 = vmul.f32 %v2347_v22, %v1247_v26 }
 0x2c9   :  { %v1291_v40 = vmul.f32 %v1289_v61, %v1266_v35  ;;  %v1276_v44 = vmul.f32 %v2345_v11, %v1275_v31 }
 0x2cb   :  { %v3128_v45 = vadd.f32 %v1292_v36, %v1291_v40  ;;  %v1277_v48 = vadd.f32 %v2345_v11, %v1276_v44 }
 0x2cd   :  { %2348 = vtanh.f32 %v3128_v45  ;;  %v1281_v56 = vsel %vm1280_vm7, %v2345_v11, %v1277_v48 }
 0x2ce   :  { %v1286_v0 = vsel %vm1283_vm10, %v1285_v57, %v1281_v56  ;;  %v1453_v57 = vrot.slane %v3128_v45, 6 }
 0x2d3   :  { %v2349_v60 = vpop.eup %2348 }
 0x2d4   :  { %v3131_v4 = vmul.f32 %v2349_v60, %v1286_v0 }
 0x2d6   :  { %v1296_v5 = vmul.f32 %v3131_v4, %v3131_v4  ;;  %v1322_v9 = vpack.c.bf16 %v3131_v4, %v3131_v4 }
 0x2d8   :  { %v1298_v13 = vsel %vm1297_vm11, %v1296_v5, 0.0  ;;  %v1324_v14 = vrot.slane %v1322_v9, 2 }
 0x2d9   :  { %1299 = vadd.xlane.f32.xlu1 %v1298_v13 }
 0x2da   :  { %1334 = vmatmul.bf16.vlgmr.msrb.gmra.mxu0 %v1324_v14  ;;  %1347 = vmatmul.bf16.vlgmr.msrb.gmra.mxu1 %v1324_v14 }
 0x2db   :  { %1360 = vmatmul.bf16.vlgmr.msrb.gmra.mxu2 %v1324_v14  ;;  %1373 = vmatmul.bf16.vlgmr.msrb.gmra.mxu3 %v1324_v14 }
 0x34c   :  { %v1300_v24 = vpop.xlane.xlu1 %1299 }
 0x34d   :  { %v3138_v43 = vadd.f32 1e-12, %v1300_v24 }
 0x357   :  { %v1335_v20 = vpop.f32.mrf.mxu0  ;;  %v1348_v25 = vpop.f32.mrf.mxu1 }
 0x358   :  { %v1382_v37 = vrot.slane %v1335_v20, 2  ;;  %v1383_v38 = vrot.slane %v1348_v25, 2 }
 0x35a   :  { %v1390_v58 = vadd.f32 %v1382_v37, %v1318_v41  ;;  %v1391_v59 = vadd.f32 %v1383_v38, %v1319_v47 }
 0x35c   :  { %v2182_v62 = vmul.f32 -1.442695, %v1390_v58  ;;  %v2183_v1 = vmul.f32 -1.442695, %v1391_v59 }
 0x35e   :  { %2350 = vpow2.f32 %v2182_v62  ;;  %v1361_v28 = vpop.f32.mrf.mxu2  ;;  %v1374_v29 = vpop.f32.mrf.mxu3 }
 0x35f   :  { %2352 = vpow2.f32 %v2183_v1  ;;  %v1385_v33 = vrot.slane %v1374_v29, 2  ;;  %v1337_v34 = vpop.f32.mrf.mxu0  ;;  %v1350_v39 = vpop.f32.mrf.mxu1  ;;  %v1384_v8 = vrot.slane %v1361_v28, 2 }
 0x361   :  { %v1393_v42 = vadd.f32 %v1385_v33, %v1321_v46  ;;  %v1392_v15 = vadd.f32 %v1384_v8, %v1320_v10 }
 0x363   :  { %v2184_v54 = vmul.f32 -1.442695, %v1393_v42 }
 0x364   :  { %v2351_v55 = vpop.eup %2350 }
 0x365   :  { %v2353_v63 = vpop.eup %2352  ;;  %v1397_v3 = vadd.f32 1.0, %v2351_v55  ;;  %2354 = vpow2.f32 %v2184_v54 }
 0x366   :  { %2356 = vrsqrt.f32 %v3138_v43  ;;  %v1416_v6 = vadd.f32 1.0, %v2353_v63  ;;  %v1363_v49 = vpop.f32.mrf.mxu2  ;;  %v1376_v7 = vpop.f32.mrf.mxu3 }
 0x367   :  { %2358 = vrcp.f32 %v1397_v3  ;;  %v1409_v22 = vand.u32 2147483648, %v1397_v3  ;;  %v1407_v31 = vand.u32 2147483647, %v1397_v3  ;;  %vm1403_vm14 = vweird.f32 %v1397_v3  ;;  %v1483_v7 = vld [vmem:[#allocation2 + $0x20] sm:$0x3] }
 0x368   :  { %2360 = vrcp.f32 %v1416_v6  ;;  %v1428_v26 = vand.u32 2147483648, %v1416_v6  ;;  %v1426_v36 = vand.u32 2147483647, %v1416_v6  ;;  %vm1422_vm15 = vweird.f32 %v1416_v6 }
 0x369   :  { %v1410_v52 = vor.u32 1.1754944e-38, %v1409_v22  ;;  %vm1408_vm2 = vcmp.eq.f32.partialorder %v1407_v31, 8.507059e+37 }
 0x36a   :  { %v1429_v60 = vor.u32 1.1754944e-38, %v1428_v26  ;;  %vm1427_vm3 = vcmp.eq.f32.partialorder %v1426_v36, 8.507059e+37 }
 0x36b   :  { %v2355_v51 = vpop.eup %2354 }
 0x36c   :  { %v3141_v2 = vpop.eup %2356  ;;  %v1436_v53 = vadd.f32 1.0, %v2355_v51 }
 0x36d   :  { %v2359_v11 = vpop.eup %2358  ;;  %v1303_v61 = vmul.f32 %v3141_v2, %v3138_v43  ;;  %vm1309_vm7 = vweird.f32 %v3141_v2 }
 0x36e   :  { %v2361_v16 = vpop.eup %2360  ;;  %v1399_v19 = vmul.f32 %v2359_v11, %v1397_v3  ;;  %2362 = vrcp.f32 %v1436_v53  ;;  %vm1404_vm12 = vweird.f32 %v2359_v11  ;;  %v1448_v45 = vand.u32 2147483648, %v1436_v53 }
 0x36f   :  { %v1418_v21 = vmul.f32 %v2361_v16, %v1416_v6  ;;  %2364 = vtanh.f32 %v1392_v15  ;;  %vm1423_vm13 = vweird.f32 %v2361_v16  ;;  %v1304_v44 = vmul.f32 %v3141_v2, %v1303_v61  ;;  %vm1405_vm0 = vmor %vm1403_vm14, %vm1404_vm12  ;;  %v1482_v6 = vld [vmem:[#allocation2 + $0x8] sm:$0x3] }
 0x370   :  { %v1400_v23 = vsub.f32 1.0, %v1399_v19  ;;  %vm1424_vm1 = vmor %vm1422_vm15, %vm1423_vm13  ;;  %vm1442_vm5 = vweird.f32 %v1436_v53  ;;  %v1446_v62 = vand.u32 2147483647, %v1436_v53  ;;  %v1449_v24 = vor.u32 1.1754944e-38, %v1448_v45 }
 0x371   :  { %v1419_v18 = vsub.f32 1.0, %v1418_v21  ;;  %v1305_v37 = vmul.f32 0.5, %v1304_v44  ;;  %vm1308_vm12 = vweird.f32 %v3138_v43  ;;  %vm1461_vm14 = vcmask 1047558  }
 0x372   :  { %v1401_v27 = vmul.f32 %v2359_v11, %v1400_v23  ;;  %vm1447_vm10 = vcmp.eq.f32.partialorder %v1446_v62, 8.507059e+37  ;;  %vm1310_vm13 = vmor %vm1308_vm12, %vm1309_vm7  ;;  %v3168_v61 = vadd.f32 1e-12, %v3114_v17  ;;  %v1484_v17 = vld [vmem:[#allocation2 + $0x28] sm:$0x3] }
 0x373   :  { %v1420_v35 = vmul.f32 %v2361_v16, %v1419_v18  ;;  %v1306_v59 = vsub.f32 1.5, %v1305_v37 }
 0x374   :  { %v2363_v40 = vpop.eup %2362  ;;  %v1402_v48 = vadd.f32 %v2359_v11, %v1401_v27 }
 0x375   :  { %v1421_v50 = vadd.f32 %v2361_v16, %v1420_v35  ;;  %v1438_v56 = vmul.f32 %v2363_v40, %v1436_v53  ;;  %v2365_v5 = vpop.eup %2364  ;;  %vm1443_vm4 = vweird.f32 %v2363_v40  ;;  %v1307_v28 = vmul.f32 %v3141_v2, %v1306_v59 }
 0x376   :  { %v1406_v0 = vsel %vm1405_vm0, %v2359_v11, %v1402_v48  ;;  %vm1444_vm6 = vmor %vm1442_vm5, %vm1443_vm4  ;;  %v1485_v11 = vld [vmem:[#allocation2 + $0x38] sm:$0x3] }
 0x377   :  { %v1411_v9 = vsel %vm1408_vm2, %v1410_v52, %v1406_v0  ;;  %v1425_v13 = vsel %vm1424_vm1, %v2361_v16, %v1421_v50  ;;  %v1439_v14 = vsub.f32 1.0, %v1438_v56  ;;  %v1311_v39 = vsel %vm1310_vm13, %v3141_v2, %v1307_v28 }
 0x378   :  { %v1430_v20 = vsel %vm1427_vm3, %v1429_v60, %v1425_v13  ;;  %v1456_v25 = vmul.f32 %v2365_v5, %v1411_v9  ;;  %v3162_v63 = vmul.f32 %v1311_v39, %v3131_v4 }
 0x379   :  { %v1455_v38 = vmul.f32 %v1453_v57, %v1430_v20  ;;  %v1440_v41 = vmul.f32 %v2363_v40, %v1439_v14 }
 0x37a   :  { %v1313_v43 = vmul.f32 %v3122_v32, %v3162_v63 }
 0x37b   :  { %v3147_v47 = vadd.f32 %v1456_v25, %v1455_v38  ;;  %v1441_v58 = vadd.f32 %v2363_v40, %v1440_v41 }
 0x37c   :  { %v1314_v3 = vsel %vm1297_vm11, %v1313_v43, 0.0 }
 0x37d   :  { %2366 = vtanh.f32 %v3147_v47  ;;  %v1445_v1 = vsel %vm1444_vm6, %v2363_v40, %v1441_v58  ;;  %v1605_v39 = vrot.slane %v3147_v47, 6 }
 0x37e   :  { %v1450_v33 = vsel %vm1447_vm10, %v1449_v24, %v1445_v1 }
 0x383   :  { %v2367_v29 = vpop.eup %2366 }
 0x384   :  { %v3153_v34 = vmul.f32 %v2367_v29, %v1450_v33 }
 0x386   :  { %v1460_v46 = vmul.f32 %v3153_v34, %v3153_v34  ;;  %v1486_v42 = vpack.c.bf16 %v3153_v34, %v3153_v34 }
 0x388   :  { %v1462_v54 = vsel %vm1461_vm14, %v1460_v46, 0.0  ;;  %v1488_v55 = vrot.slane %v1486_v42, 3 }
 0x389   :  { %1463 = vadd.xlane.f32.xlu1 %v1462_v54 }
 0x38a   :  { %1498 = vmatmul.bf16.vlgmr.msra.gmra.mxu0 %v1488_v55  ;;  %1511 = vmatmul.bf16.vlgmr.msra.gmra.mxu1 %v1488_v55 }
 0x38b   :  { %1524 = vmatmul.bf16.vlgmr.msra.gmra.mxu2 %v1488_v55  ;;  %1537 = vmatmul.bf16.vlgmr.msra.gmra.mxu3 %v1488_v55 }
 0x391   :  { %1315 = vadd.xlane.f32.xlu1 %v1314_v3 }
 0x3fc   :  { %v1464_v36 = vpop.xlane.xlu1 %1463 }
 0x3fd   :  { %v3173_v48 = vadd.f32 1e-12, %v1464_v36 }
 0x407   :  { %v1499_v49 = vpop.f32.mrf.mxu0  ;;  %v1512_v8 = vpop.f32.mrf.mxu1 }
 0x408   :  { %v1542_v51 = vadd.f32 %v1499_v49, %v1482_v6  ;;  %v1543_v2 = vadd.f32 %v1512_v8, %v1483_v7 }
 0x40a   :  { %v2185_v10 = vmul.f32 -1.442695, %v1542_v51  ;;  %v2186_v4 = vmul.f32 -1.442695, %v1543_v2 }
 0x40c   :  { %2368 = vpow2.f32 %v2185_v10 }
 0x40d   :  { %2370 = vpow2.f32 %v2186_v4 }
 0x40e   :  { %v1525_v53 = vpop.f32.mrf.mxu2  ;;  %v1538_v15 = vpop.f32.mrf.mxu3 }
 0x40f   :  { %v1545_v16 = vadd.f32 %v1538_v15, %v1485_v11  ;;  %v1501_v19 = vpop.f32.mrf.mxu0  ;;  %v1514_v21 = vpop.f32.mrf.mxu1  ;;  %v1544_v56 = vadd.f32 %v1525_v53, %v1484_v17 }
 0x411   :  { %v2187_v23 = vmul.f32 -1.442695, %v1545_v16 }
 0x412   :  { %v2369_v18 = vpop.eup %2368 }
 0x413   :  { %v2371_v22 = vpop.eup %2370  ;;  %v1549_v26 = vadd.f32 1.0, %v2369_v18  ;;  %2372 = vpow2.f32 %v2187_v23 }
 0x414   :  { %2374 = vrsqrt.f32 %v3168_v61  ;;  %v1568_v27 = vadd.f32 1.0, %v2371_v22 }
 0x415   :  { %2376 = vrcp.f32 %v1549_v26  ;;  %v1561_v14 = vand.u32 2147483648, %v1549_v26  ;;  %v1559_v37 = vand.u32 2147483647, %v1549_v26  ;;  %vm1555_vm0 = vweird.f32 %v1549_v26 }
 0x416   :  { %2378 = vrcp.f32 %v1568_v27  ;;  %v1527_v31 = vpop.f32.mrf.mxu2  ;;  %v1540_v35 = vpop.f32.mrf.mxu3  ;;  %v1580_v20 = vand.u32 2147483648, %v1568_v27  ;;  %v1578_v41 = vand.u32 2147483647, %v1568_v27  ;;  %vm1574_vm1 = vweird.f32 %v1568_v27 }
 0x417   :  { %v1562_v62 = vor.u32 1.1754944e-38, %v1561_v14  ;;  %vm1560_vm4 = vcmp.eq.f32.partialorder %v1559_v37, 8.507059e+37  ;;  %v2299_v37 = vld [vmem:[#allocation3] ss:$0 sm:$0xff] }
 0x418   :  { %v1581_v29 = vor.u32 1.1754944e-38, %v1580_v20  ;;  %vm1579_vm5 = vcmp.eq.f32.partialorder %v1578_v41, 8.507059e+37  ;;  %v987_v41 = vpop.xlane.xlu0 %986 }
 0x419   :  { %v2373_v40 = vpop.eup %2372 }
 0x41a   :  { %v3171_v44 = vpop.eup %2374  ;;  %v1588_v52 = vadd.f32 1.0, %v2373_v40 }
 0x41b   :  { %v2377_v50 = vpop.eup %2376  ;;  %v1139_v5 = vmul.f32 %v3171_v44, %v3168_v61  ;;  %vm1145_vm12 = vweird.f32 %v3171_v44 }
 0x41c   :  { %v2379_v57 = vpop.eup %2378  ;;  %v1551_v60 = vmul.f32 %v2377_v50, %v1549_v26  ;;  %2380 = vrcp.f32 %v1588_v52  ;;  %vm1556_vm11 = vweird.f32 %v2377_v50  ;;  %v1600_v53 = vand.u32 2147483648, %v1588_v52 }
 0x41d   :  { %v1570_v0 = vmul.f32 %v2379_v57, %v1568_v27  ;;  %2382 = vrsqrt.f32 %v3173_v48  ;;  %vm1575_vm15 = vweird.f32 %v2379_v57  ;;  %v1140_v59 = vmul.f32 %v3171_v44, %v1139_v5  ;;  %vm1557_vm2 = vmor %vm1555_vm0, %vm1556_vm11 }
 0x41e   :  { %v1552_v9 = vsub.f32 1.0, %v1551_v60  ;;  %2384 = vtanh.f32 %v1544_v56  ;;  %vm1576_vm3 = vmor %vm1574_vm1, %vm1575_vm15  ;;  %vm1594_vm7 = vweird.f32 %v1588_v52  ;;  %v1598_v47 = vand.u32 2147483647, %v1588_v52 }
 0x41f   :  { %v1571_v13 = vsub.f32 1.0, %v1570_v0  ;;  %v1141_v6 = vmul.f32 0.5, %v1140_v59  ;;  %v1601_v16 = vor.u32 1.1754944e-38, %v1600_v53  ;;  %vm1144_vm11 = vweird.f32 %v3168_v61 }
 0x420   :  { %v1553_v25 = vmul.f32 %v2377_v50, %v1552_v9  ;;  %vm1599_vm13 = vcmp.eq.f32.partialorder %v1598_v47, 8.507059e+37  ;;  %vm1146_vm15 = vmor %vm1144_vm11, %vm1145_vm12  ;;  %vm1472_vm1 = vweird.f32 %v3173_v48 }
 0x421   :  { %v1572_v38 = vmul.f32 %v2379_v57, %v1571_v13  ;;  %v1142_v10 = vsub.f32 1.5, %v1141_v6 }
 0x422   :  { %v2381_v58 = vpop.eup %2380  ;;  %v1554_v45 = vadd.f32 %v2377_v50, %v1553_v25 }
 0x423   :  { %v1573_v1 = vadd.f32 %v2379_v57, %v1572_v38  ;;  %v1590_v24 = vmul.f32 %v2381_v58, %v1588_v52  ;;  %v2383_v28 = vpop.eup %2382  ;;  %vm1595_vm6 = vweird.f32 %v2381_v58  ;;  %v1143_v19 = vmul.f32 %v3171_v44, %v1142_v10 }
 0x424   :  { %v1558_v33 = vsel %vm1557_vm2, %v2377_v50, %v1554_v45  ;;  %v2385_v46 = vpop.eup %2384  ;;  %v1467_v49 = vmul.f32 %v2383_v28, %v3173_v48  ;;  %vm1596_vm10 = vmor %vm1594_vm7, %vm1595_vm6  ;;  %vm1473_vm0 = vweird.f32 %v2383_v28  ;;  %vm1731_vm6 = vcmask 31774  }
 0x425   :  { %v1563_v42 = vsel %vm1560_vm4, %v1562_v62, %v1558_v33  ;;  %v1577_v54 = vsel %vm1576_vm3, %v2379_v57, %v1573_v1  ;;  %v1591_v55 = vsub.f32 1.0, %v1590_v24  ;;  %v1147_v26 = vsel %vm1146_vm15, %v3171_v44, %v1143_v19  ;;  %vm1474_vm2 = vmor %vm1472_vm1, %vm1473_vm0 }
 0x426   :  { %v1582_v43 = vsel %vm1579_vm5, %v1581_v29, %v1577_v54  ;;  %v1608_v3 = vmul.f32 %v2385_v46, %v1563_v42  ;;  %v1468_v4 = vmul.f32 %v2383_v28, %v1467_v49  ;;  %v3187_v35 = vmul.f32 %v1147_v26, %v3072_v12 }
 0x427   :  { %v1607_v7 = vmul.f32 %v1605_v39, %v1582_v43  ;;  %v1592_v8 = vmul.f32 %v2381_v58, %v1591_v55  ;;  %v992_v62 = vadd.f32 %v2299_v37, %v987_v41  ;;  %vm1719_vm5 = vcmask 21524  }
 0x428   :  { %v1469_v15 = vmul.f32 0.5, %v1468_v4  ;;  %v1149_v61 = vmul.f32 %v3122_v32, %v3187_v35  ;;  %vm1743_vm7 = vcmask 33824  }
 0x429   :  { %v1609_v51 = vadd.f32 %v1608_v3, %v1607_v7  ;;  %v1593_v2 = vadd.f32 %v2381_v58, %v1592_v8 }
 0x42a   :  { %v1470_v22 = vsub.f32 1.5, %v1469_v15  ;;  %v1150_v17 = vsel %vm1133_vm8, %v1149_v61, 0.0 }
 0x42b   :  { %2386 = vtanh.f32 %v1609_v51  ;;  %v1597_v11 = vsel %vm1596_vm10, %v2381_v58, %v1593_v2  ;;  %v1316_v58 = vpop.xlane.xlu1 %1315 }
 0x42c   :  { %v1602_v23 = vsel %vm1599_vm13, %v1601_v16, %v1597_v11  ;;  %v1471_v36 = vmul.f32 %v2383_v28, %v1470_v22  ;;  %v1317_v1 = vadd.f32 %v2299_v37, %v1316_v58 }
 0x42e   :  { %v1475_v40 = vsel %vm1474_vm2, %v2383_v28, %v1471_v36  ;;  %v1638_v29 = vrot.slane %v1317_v1, 4 }
 0x42f   :  { %v3194_v44 = vmul.f32 %v1475_v40, %v3153_v34 }
 0x431   :  { %v2387_v21 = vpop.eup %2386  ;;  %v1477_v12 = vmul.f32 %v3122_v32, %v3194_v44 }
 0x432   :  { %v1611_v18 = vmul.f32 %v2387_v21, %v1602_v23 }
 0x433   :  { %v1478_v52 = vsel %vm1461_vm14, %v1477_v12, 0.0  ;;  %vm1707_vm14 = vcmask 11274  }
 0x434   :  { %v1612_v27 = vmul.f32 %v1611_v18, %v1611_v18 }
 0x436   :  { %v1613_v31 = vsel %vm965_vm9, %v1612_v27, 0.0 }
 0x437   :  { %1614 = vadd.xlane.f32.xlu2 %v1613_v31 }
 0x43f   :  { %1151 = vadd.xlane.f32.xlu2 %v1150_v17 }
 0x447   :  { %1479 = vadd.xlane.f32.xlu2 %v1478_v52 }
 0x4aa   :  { %v1615_v50 = vpop.xlane.xlu2 %1614 }
 0x4ab   :  { %v1616_v56 = vadd.f32 1e-12, %v1615_v50 }
 0x4ad   :  { %2388 = vrsqrt.f32 %v1616_v56  ;;  %vm1623_vm8 = vweird.f32 %v1616_v56 }
 0x4b2   :  { %v1152_v25 = vpop.xlane.xlu2 %1151 }
 0x4b3   :  { %v2389_v48 = vpop.eup %2388  ;;  %v1153_v38 = vadd.f32 %v2299_v37, %v1152_v25 }
 0x4b4   :  { %v1618_v57 = vmul.f32 %v2389_v48, %v1616_v56  ;;  %vm1624_vm3 = vweird.f32 %v2389_v48 }
 0x4b5   :  { %vm1625_vm4 = vmor %vm1623_vm8, %vm1624_vm3  ;;  %v1634_v45 = vrot.slane %v1153_v38, 2 }
 0x4b6   :  { %v1619_v60 = vmul.f32 %v2389_v48, %v1618_v57 }
 0x4b7   :  { %v1636_v28 = vmax.f32 %v992_v62, %v1634_v45 }
 0x4b8   :  { %v1620_v0 = vmul.f32 0.5, %v1619_v60 }
 0x4b9   :  { %v1640_v39 = vmax.f32 %v1636_v28, %v1638_v29 }
 0x4ba   :  { %v1621_v5 = vsub.f32 1.5, %v1620_v0  ;;  %v1480_v59 = vpop.xlane.xlu2 %1479 }
 0x4bb   :  { %v1481_v24 = vadd.f32 %v2299_v37, %v1480_v59 }
 0x4bc   :  { %v1622_v9 = vmul.f32 %v2389_v48, %v1621_v5 }
 0x4bd   :  { %v1642_v33 = vrot.slane %v1481_v24, 6 }
 0x4be   :  { %v1626_v34 = vsel %vm1625_vm4, %v2389_v48, %v1622_v9 }
 0x4bf   :  { %v3199_v13 = vmul.f32 %v1626_v34, %v1611_v18  ;;  %v1644_v46 = vmax.f32 %v1640_v39, %v1642_v33 }
 0x4c1   :  { %v1628_v14 = vmul.f32 %v3122_v32, %v3199_v13  ;;  %1751 = vst [vmem:[#allocation7] sm:$0x3] %v3199_v13 }
 0x4c2   :  { %1762 = dma.vmem_to_hbm [thread:$0]  %s1758_s0, 32, %s1760_s26, [#allocation6]  }
 0x4c3   :  { %v1629_v20 = vsel %vm965_vm9, %v1628_v14, 0.0  ;;  %vm1694_vm9 = vcmask 1024  }
 0x4c4   :  { %1630 = vadd.xlane.f32.xlu0 %v1629_v20 }
 0x537   :  { %v1631_v32 = vpop.xlane.xlu0 %1630 }
 0x538   :  { %v1632_v42 = vadd.f32 %v2299_v37, %v1631_v32 }
 0x53a   :  { %v1645_v54 = vmax.f32 %v1644_v46, %v1632_v42 }
 0x53c   :  { %v1646_v55 = vsub.f32 %v992_v62, %v1645_v54  ;;  %v1650_v43 = vrot.slane %v1645_v54, 6  ;;  %v1655_v3 = vrot.slane %v1645_v54, 4  ;;  %v1660_v6 = vrot.slane %v1645_v54, 2 }
 0x53d   :  { %v1665_v53 = vsub.f32 %v1632_v42, %v1645_v54 }
 0x53e   :  { %v1647_v49 = vmul.f32 1.442695, %v1646_v55  ;;  %v1652_v7 = vsub.f32 %v1153_v38, %v1650_v43  ;;  %v1657_v8 = vsub.f32 %v1317_v1, %v1655_v3  ;;  %v1662_v51 = vsub.f32 %v1481_v24, %v1660_v6 }
 0x53f   :  { %v1666_v47 = vmul.f32 1.442695, %v1665_v53 }
 0x540   :  { %v1653_v2 = vmul.f32 1.442695, %v1652_v7  ;;  %v1658_v10 = vmul.f32 1.442695, %v1657_v8  ;;  %v1663_v4 = vmul.f32 1.442695, %v1662_v51  ;;  %2390 = vpow2.f32 %v1647_v49 }
 0x542   :  { %2392 = vpow2.f32 %v1653_v2 }
 0x543   :  { %2394 = vpow2.f32 %v1658_v10 }
 0x544   :  { %2396 = vpow2.f32 %v1663_v4 }
 0x545   :  { %2398 = vpow2.f32 %v1666_v47 }
 0x546   :  { %v2391_v11 = vpop.eup %2390 }
 0x548   :  { %v2393_v15 = vpop.eup %2392 }
 0x549   :  { %v2395_v16 = vpop.eup %2394  ;;  %v1669_v19 = vrot.slane %v2393_v15, 2 }
 0x54a   :  { %v2397_v21 = vpop.eup %2396  ;;  %v1673_v18 = vrot.slane %v2395_v16, 4 }
 0x54b   :  { %v1671_v23 = vadd.f32 %v2391_v11, %v1669_v19  ;;  %v1677_v26 = vrot.slane %v2397_v21, 6  ;;  %v2399_v31 = vpop.eup %2398 }
 0x54d   :  { %v1675_v22 = vadd.f32 %v1673_v18, %v1671_v23 }
 0x54f   :  { %v1679_v27 = vadd.f32 %v1677_v26, %v1675_v22 }
 0x551   :  { %v1680_v36 = vadd.f32 %v2399_v31, %v1679_v27 }
 0x553   :  { %2400 = vrcp.f32 %v1680_v36 }
 0x559   :  { %v2401_v61 = vpop.eup %2400 }
 0x55a   :  { %v1682_v40 = vmul.f32 %v2401_v61, %v2391_v11  ;;  %v1687_v17 = vrot.slane %v2401_v61, 4  ;;  %v1684_v12 = vrot.slane %v2401_v61, 6  ;;  %v1690_v56 = vrot.slane %v2401_v61, 2 }
 0x55b   :  { %v1693_v57 = vmul.f32 %v2401_v61, %v2399_v31 }
 0x55c   :  { %1698 = vperm.xlu1 %2294, %v1682_v40   ;;  %v1689_v52 = vmul.f32 %v2395_v16, %v1687_v17  ;;  %v1686_v50 = vmul.f32 %v2393_v15, %v1684_v12  ;;  %1695 = vst.msk [vmem:[#allocation8] sm:$0x3] %vm1694_vm9, %v1682_v40  ;;  %v1692_v48 = vmul.f32 %v2397_v21, %v1690_v56 }
 0x55e   :  { %1716 = vrot.lane.b32.xlu0 %v1689_v52, %s2484_s6  ;;  %1704 = vrot.lane.b32.xlu2 %v1686_v50, %s2485_s7 }
 0x564   :  { %1722 = vperm.xlu1 %2294, %v1689_v52  }
 0x566   :  { %1728 = vrot.lane.b32.xlu0 %v1692_v48, %s2487_s27  ;;  %1710 = vperm.xlu2 %2295, %v1686_v50  }
 0x56c   :  { %1746 = vperm.xlu1 %2294, %v1693_v57  }
 0x56e   :  { %1740 = vrot.lane.b32.xlu0 %v1693_v57, %s2488_s28  ;;  %1734 = vperm.xlu2 %2295, %v1692_v48  }
 0x5b8   :  { %v1705_v60 = vpop.permute.xlu2 %1704 }
 0x5b9   :  { %1708 = vst.msk [vmem:[#allocation8 - $0x2] sm:$0xc] %vm1707_vm14, %v1705_v60 }
 0x5c0   :  { %v1711_v0 = vpop.permute.xlu2 %1710 }
 0x5c1   :  { %v1713_v5 = vmul.f32 %v1711_v0, %v3187_v35 }
 0x5c3   :  { %1714 = vst [vmem:[%s3240_s9] sm:$0xc] %v1713_v5 }
 0x5c8   :  { %v1735_v9 = vpop.permute.xlu2 %1734 }
 0x5c9   :  { %v1737_v34 = vmul.f32 %v1735_v9, %v3194_v44 }
 0x5cb   :  { %1738 = vst [vmem:[%s3240_s9] sm:$0xc0] %v1737_v34 }
 0x5ce   :  { %v1699_v14 = vpop.permute.xlu1 %1698 }
 0x5cf   :  { %v1701_v20 = vmul.f32 %v1699_v14, %v3117_v30 }
 0x5d0   :  { %v1717_v25 = vpop.permute.xlu0 %1716 }
 0x5d1   :  { %1702 = vst [vmem:[%s3240_s9] sm:$0x3] %v1701_v20 }
 0x5d2   :  { %1720 = vst.msk [vmem:[#allocation8 - $0x4] sm:$0x30] %vm1719_vm5, %v1717_v25 }
 0x5d6   :  { %v1723_v35 = vpop.permute.xlu1 %1722 }
 0x5d7   :  { %v1725_v37 = vmul.f32 %v1723_v35, %v3162_v63 }
 0x5d8   :  { %v1729_v38 = vpop.permute.xlu0 %1728 }
 0x5d9   :  { %1726 = vst [vmem:[%s3240_s9] sm:$0x30] %v1725_v37 }
 0x5da   :  { %1732 = vst.msk [vmem:[#allocation8 - $0x6] sm:$0xc0] %vm1731_vm6, %v1729_v38 }
 0x5de   :  { %v1747_v30 = vpop.permute.xlu1 %1746 }
 0x5df   :  { %v1749_v44 = vmul.f32 %v1747_v30, %v3199_v13 }
 0x5e0   :  { %v1741_v41 = vpop.permute.xlu0 %1740 }
 0x5e1   :  { %1750 = vst [vmem:[%s3240_s9 + $0x8] sm:$0x3] %v1749_v44 }
 0x5e2   :  { %1744 = vst.msk [vmem:[#allocation8] sm:$0x3] %vm1743_vm7, %v1741_v41 }
 0x5e3   :  { %1775 = dma.vmem_to_hbm [thread:$0]  %s1771_s1, 32, %s1773_s19, [#allocation9]  }
 0x5e4   :  { %2476 = dma.done.wait [#allocation6], 32  }
 0x5e5   :  { %2477 = vsyncadd [#allocation6], 4294967264 }
 0x5e6   :  { %2478 = dma.done.wait [#allocation9], 32  }
 0x5e7   :  { %2479 = vsyncadd [#allocation9], 4294967264 }
 0x5e8   :  { %1786 = vsyncpa [#allocation5], 1 }
 0x5e9   :  { %1787 = vsyncpa [#allocation6], 1 }
 0x5ea   :  { %1788 = vsyncpa [#allocation9], 1 }

</bundles_post_ra>
